<compile_context>
chip_gen: v7x
topology: tpu7x:2x2x1
jax: 0.10.0
libtpu: 0.0.40
codegen_flags: <defaults>
</compile_context>

<pallas_src>
import functools

import jax
import jax.numpy as jnp
from jax.experimental import pallas as pl
from jax.experimental.pallas import tpu as pltpu

LN_EPS = 1e-5  # PyTorch nn.LayerNorm default


def _round_up(x, m):
    return ((x + m - 1) // m) * m


def _layernorm(v, gamma, beta):
    # two-pass variance: matches PyTorch LayerNorm, avoids E[x^2]-mean^2 cancellation
    mu = jnp.mean(v, axis=-1, keepdims=True)
    c = v - mu
    var = jnp.mean(c * c, axis=-1, keepdims=True)
    return c * jax.lax.rsqrt(var + LN_EPS) * gamma + beta


def encoder_kernel(x_ref, w1_ref, b1_ref,
                   lnA_g_ref, lnA_b_ref, wa_ref, wb_ref,
                   lnO_g_ref, lnO_b_ref, wout_ref, bout_ref,
                   out_ref, *, depth):
    def silu(v):
        # divide lands on the EUP slot (free w.r.t. the VPU) via approx reciprocal
        return v * pl.reciprocal(1.0 + jnp.exp(-v), approx=True)

    # input2hidden: Linear + SiLU (Dropout is identity in eval mode)
    x = x_ref[...]                                          # bf16, lane-padded K
    h = silu(jnp.dot(x, w1_ref[...], preferred_element_type=jnp.float32)
             + b1_ref[...])                                 # f32 (TB, H)

    def layer(d, h):
        # f32 -> bf16 cast exactly once per matmul operand (as LN / SiLU epilogue)
        t = _layernorm(h, lnA_g_ref[d], lnA_b_ref[d]).astype(jnp.bfloat16)
        t = silu(jnp.dot(t, wa_ref[d],
                         preferred_element_type=jnp.float32)).astype(jnp.bfloat16)
        t = jnp.dot(t, wb_ref[d], preferred_element_type=jnp.float32)
        return _layernorm(h + t, lnO_g_ref[d], lnO_b_ref[d])

    if depth <= 3:
        # tiny static depth: full unroll keeps LLO visibility without live-range blowup
        for d in range(depth):
            h = layer(d, h)
    else:
        # bound live ranges to ~2 layers of intermediates (vreg/VMEM spill pressure)
        h = jax.lax.fori_loop(0, depth, layer, h, unroll=2)

    # hidden2output (output lane-padded to a multiple of 128 -> unmasked stores)
    y = jnp.dot(h.astype(jnp.bfloat16), wout_ref[...],
                preferred_element_type=jnp.float32) + bout_ref[...]
    out_ref[...] = y.astype(out_ref.dtype)


def _vmem_ceiling_bytes():
    try:
        cap = pltpu.get_tpu_info().vmem_capacity_bytes
    except Exception:
        cap = 64 * (1 << 20)      # conservative fallback (v7x per-TC VMEM)
    return int(0.85 * cap)        # leave headroom for Mosaic internal scratch


def encoder_forward(x, params, depth, out_dtype=jnp.float32):
    B, K = x.shape
    H = params["w1"].shape[1]
    N = params["wout"].shape[1]
    assert H % 128 == 0, "hidden_dim must be a multiple of 128 (TPU lane width)"
    # NOTE: on v6e/v7x (256x256 MXU) prefer H >= 256 model configs; with H=128 the
    # only in-kernel lever is a large batch tile (full M dimension), handled below.

    # lane padding (lane-dense loads / unmasked stores, fuller MXU K dim)
    K_pad = _round_up(K, 128)
    N_pad = _round_up(N, 128)

    # pad + cast (zero padding keeps matmuls exact; pads sliced off at the end;
    # keep pad value 0 so dead rows stay finite through LayerNorm's rsqrt(eps))
    w1   = jnp.pad(params["w1"], ((0, K_pad - K), (0, 0))).astype(jnp.bfloat16)
    b1   = params["b1"]
    wa   = params["wa"].astype(jnp.bfloat16)
    wb   = params["wb"].astype(jnp.bfloat16)
    wout = jnp.pad(params["wout"], ((0, 0), (0, N_pad - N))).astype(jnp.bfloat16)
    bout = jnp.pad(params["bout"], ((0, 0), (0, N_pad - N)))
    lnA_g, lnA_b = params["lnA_g"], params["lnA_b"]
    lnO_g, lnO_b = params["lnO_g"], params["lnO_b"]

    # ---- generation-aware batch tile --------------------------------------
    vmem_ceiling = _vmem_ceiling_bytes()
    bf16, f32 = 2, 4
    out_itemsize = jnp.dtype(out_dtype).itemsize
    weight_bytes = ((w1.size + wa.size + wb.size + wout.size) * bf16
                    + (b1.size + bout.size + lnA_g.size + lnA_b.size
                       + lnO_g.size + lnO_b.size) * f32)
    # per batch row: double-buffered x tile + double-buffered out tile + generous
    # allowance for f32/bf16 activation temporaries (h, t, exp/LN intermediates)
    per_row_bytes = 2 * K_pad * bf16 + 2 * N_pad * out_itemsize + 10 * H * f32

    # budget assumes worst-case (double-buffered) weights so the fallback path fits too
    budget = vmem_ceiling - 2 * weight_bytes - (8 << 20)
    tb_cap = max(16, min(1024, (budget // per_row_bytes) // 16 * 16))

    B16 = _round_up(B, 16)            # bf16 packs 16 rows per sublane group
    TB = min(tb_cap, B16)
    if TB >= 32 and _round_up(B16, TB) // TB < 2:
        # >= 2 grid steps so the "parallel" batch axis can span both TCs on v7x
        TB = _round_up(TB // 2, 16)
    B_pad = _round_up(B, TB)
    n_tiles = B_pad // TB

    x_p = jnp.pad(x, ((0, B_pad - B), (0, K_pad - K))).astype(jnp.bfloat16)
    args = (x_p, w1, b1, lnA_g, lnA_b, wa, wb, lnO_g, lnO_b, wout, bout)

    vmem_needed = 2 * weight_bytes + TB * per_row_bytes
    vmem_limit = int(min(vmem_ceiling,
                         max(32 * (1 << 20), int(1.25 * vmem_needed) + (4 << 20))))

    def build(single_buffer_weights):
        def resident(a):
            # full-array block, constant index_map -> stays VMEM-resident across grid
            nd = a.ndim
            idx = lambda i, _nd=nd: (0,) * _nd
            if single_buffer_weights:
                try:
                    # constant blocks never change -> no need to double-buffer them
                    return pl.BlockSpec(a.shape, idx, pipeline_mode=pl.Buffered(1))
                except Exception:
                    pass
            return pl.BlockSpec(a.shape, idx)

        in_specs = ([pl.BlockSpec((TB, K_pad), lambda i: (i, 0))]
                    + [resident(a) for a in args[1:]])
        out_specs = pl.BlockSpec((TB, N_pad), lambda i: (i, 0))
        return pl.pallas_call(
            functools.partial(encoder_kernel, depth=depth),
            out_shape=jax.ShapeDtypeStruct((B_pad, N_pad), out_dtype),
            grid=(n_tiles,),
            in_specs=in_specs,
            out_specs=out_specs,
            compiler_params=pltpu.CompilerParams(
                dimension_semantics=("parallel",),   # megacore sharding on v7x
                vmem_limit_bytes=vmem_limit,
            ),
        )

    try:
        out_p = build(single_buffer_weights=True)(*args)
    except Exception:
        # fall back to default (double-buffered) weight specs if Buffered(1) is not
        # supported by this jax/Mosaic version
        out_p = build(single_buffer_weights=False)(*args)
    return out_p[:B, :N]


def reference_forward(x, params, depth):
    """Pure-JAX reference mirroring the kernel math (bf16 matmuls, f32 accum,
    two-pass LayerNorm)."""
    def mm(a, w):
        return jnp.dot(a.astype(jnp.bfloat16), w.astype(jnp.bfloat16),
                       preferred_element_type=jnp.float32)
    h = jax.nn.silu(mm(x, params["w1"]) + params["b1"])
    for d in range(depth):
        t = _layernorm(h, params["lnA_g"][d], params["lnA_b"][d])
        t = jax.nn.silu(mm(t, params["wa"][d]))
        t = mm(t, params["wb"][d])
        h = _layernorm(h + t, params["lnO_g"][d], params["lnO_b"][d])
    return mm(h, params["wout"]) + params["bout"]


def init_params(key, input_dim, hidden_dim, output_dim, depth):
    ks = jax.random.split(key, 8)
    scale_in = 1.0 / jnp.sqrt(input_dim)
    scale_h = 1.0 / jnp.sqrt(hidden_dim)
    params = {
        # Linear weights stored pre-transposed: (in_features, out_features)
        "w1": jax.random.uniform(ks[0], (input_dim, hidden_dim), jnp.float32,
                                 -scale_in, scale_in),
        "b1": jax.random.uniform(ks[1], (1, hidden_dim), jnp.float32,
                                 -scale_in, scale_in),
        # per-layer LayerNorm (inside the residual branch): gamma=1, beta=0
        "lnA_g": jnp.ones((depth, 1, hidden_dim), jnp.float32),
        "lnA_b": jnp.zeros((depth, 1, hidden_dim), jnp.float32),
        # per-layer Linear(hidden, hidden, bias=False) x2
        "wa": jax.random.uniform(ks[2], (depth, hidden_dim, hidden_dim),
                                 jnp.float32, -scale_h, scale_h),
        "wb": jax.random.uniform(ks[3], (depth, hidden_dim, hidden_dim),
                                 jnp.float32, -scale_h, scale_h),
        # outer LayerNorms
        "lnO_g": jnp.ones((depth, 1, hidden_dim), jnp.float32),
        "lnO_b": jnp.zeros((depth, 1, hidden_dim), jnp.float32),
        # hidden2output
        "wout": jax.random.uniform(ks[4], (hidden_dim, output_dim), jnp.float32,
                                   -scale_h, scale_h),
        "bout": jax.random.uniform(ks[5], (1, output_dim), jnp.float32,
                                   -scale_h, scale_h),
    }
    return params


if __name__ == "__main__":
    INPUT_DIM, HIDDEN_DIM, OUTPUT_DIM, DEPTH = 32, 128, 32, 2

    key = jax.random.PRNGKey(0)
    k_params, k_x1, k_x2 = jax.random.split(key, 3)
    params = init_params(k_params, INPUT_DIM, HIDDEN_DIM, OUTPUT_DIM, DEPTH)

    # small batch (single grid step)
    B1 = 8
    x1 = jax.random.normal(k_x1, (B1, INPUT_DIM), jnp.float32)
    out1 = jax.block_until_ready(encoder_forward(x1, params, DEPTH))
    ref1 = reference_forward(x1, params, DEPTH)
    assert out1.shape == (B1, OUTPUT_DIM)
    assert bool(jnp.all(jnp.isfinite(out1)))
    # tolerance covers bf16 matmul rounding + the EUP approx-reciprocal sigmoid
    assert jnp.allclose(out1, ref1, atol=2e-2, rtol=2e-2), "mismatch vs reference (B=8)"

    # larger, non-multiple batch (grid > 1: batch tiling, padding, parallel axis)
    B2 = 300
    x2 = jax.random.normal(k_x2, (B2, INPUT_DIM), jnp.float32)
    out2 = jax.block_until_ready(encoder_forward(x2, params, DEPTH))
    ref2 = reference_forward(x2, params, DEPTH)
    assert out2.shape == (B2, OUTPUT_DIM)
    assert bool(jnp.all(jnp.isfinite(out2)))
    assert jnp.allclose(out2, ref2, atol=2e-2, rtol=2e-2), "mismatch vs reference (B=300)"

    print("KERNEL_OK")
</pallas_src>

<mosaic_0001>
module attributes {stable_mosaic.version = 11 : i64} {
  func.func @encoder_kernel(%arg0: i32, %arg1: memref<16x128xbf16, #tpu.memory_space<vmem>>, %arg2: memref<128x128xbf16, #tpu.memory_space<vmem>>, %arg3: memref<1x128xf32, #tpu.memory_space<vmem>>, %arg4: memref<2x1x128xf32, #tpu.memory_space<vmem>>, %arg5: memref<2x1x128xf32, #tpu.memory_space<vmem>>, %arg6: memref<2x128x128xbf16, #tpu.memory_space<vmem>>, %arg7: memref<2x128x128xbf16, #tpu.memory_space<vmem>>, %arg8: memref<2x1x128xf32, #tpu.memory_space<vmem>>, %arg9: memref<2x1x128xf32, #tpu.memory_space<vmem>>, %arg10: memref<128x128xbf16, #tpu.memory_space<vmem>>, %arg11: memref<1x128xf32, #tpu.memory_space<vmem>>, %arg12: memref<16x128xf32, #tpu.memory_space<vmem>>) attributes {dimension_semantics = [#tpu.dimension_semantics<parallel>], iteration_bounds = array<i64: 1>, scalar_prefetch = 0 : i64, scratch_operands = 0 : i64, tpu.core_type = #tpu.core_type<tc>, window_params = [{transform_indices = @transform_0, window_bounds = array<i64: 16, 128>}, {pipeline_mode = #tpu.pipeline_mode<synchronous>, transform_indices = @transform_1, window_bounds = array<i64: 128, 128>}, {pipeline_mode = #tpu.pipeline_mode<synchronous>, transform_indices = @transform_2, window_bounds = array<i64: 1, 128>}, {pipeline_mode = #tpu.pipeline_mode<synchronous>, transform_indices = @transform_3, window_bounds = array<i64: 2, 1, 128>}, {pipeline_mode = #tpu.pipeline_mode<synchronous>, transform_indices = @transform_4, window_bounds = array<i64: 2, 1, 128>}, {pipeline_mode = #tpu.pipeline_mode<synchronous>, transform_indices = @transform_5, window_bounds = array<i64: 2, 128, 128>}, {pipeline_mode = #tpu.pipeline_mode<synchronous>, transform_indices = @transform_6, window_bounds = array<i64: 2, 128, 128>}, {pipeline_mode = #tpu.pipeline_mode<synchronous>, transform_indices = @transform_7, window_bounds = array<i64: 2, 1, 128>}, {pipeline_mode = #tpu.pipeline_mode<synchronous>, transform_indices = @transform_8, window_bounds = array<i64: 2, 1, 128>}, {pipeline_mode = #tpu.pipeline_mode<synchronous>, transform_indices = @transform_9, window_bounds = array<i64: 128, 128>}, {pipeline_mode = #tpu.pipeline_mode<synchronous>, transform_indices = @transform_10, window_bounds = array<i64: 1, 128>}, {transform_indices = @transform_11, window_bounds = array<i64: 16, 128>}]} {
    %c0 = arith.constant 0 : index
    %c0_0 = arith.constant 0 : index
    %0 = vector.load %arg1[%c0, %c0_0] : memref<16x128xbf16, #tpu.memory_space<vmem>>, vector<16x128xbf16>
    %c0_1 = arith.constant 0 : index
    %c0_2 = arith.constant 0 : index
    %1 = vector.load %arg2[%c0_1, %c0_2] : memref<128x128xbf16, #tpu.memory_space<vmem>>, vector<128x128xbf16>
    %cst = arith.constant dense<0.000000e+00> : vector<16x128xf32>
    %2 = tpu.matmul %0, %1, %cst {dimension_numbers = #tpu.dot_dimension_numbers<[1], [0], [0], [1], [0, 0, 1, 1], [], []>} : vector<16x128xbf16>, vector<128x128xbf16>, vector<16x128xf32> -> vector<16x128xf32>
    %c0_3 = arith.constant 0 : index
    %c0_4 = arith.constant 0 : index
    %3 = vector.load %arg3[%c0_3, %c0_4] : memref<1x128xf32, #tpu.memory_space<vmem>>, vector<1x128xf32>
    %4 = vector.broadcast %3 : vector<1x128xf32> to vector<16x128xf32>
    %5 = arith.addf %2, %4 : vector<16x128xf32>
    %cst_5 = arith.constant 0.000000e+00 : f32
    %6 = vector.broadcast %cst_5 : f32 to vector<16x128xf32>
    %7 = arith.subf %6, %5 : vector<16x128xf32>
    %8 = math.exp %7 : vector<16x128xf32>
    %cst_6 = arith.constant 1.000000e+00 : f32
    %9 = vector.broadcast %cst_6 : f32 to vector<16x128xf32>
    %10 = arith.addf %9, %8 : vector<16x128xf32>
    %11 = tpu.reciprocal %10 {approx = true} : vector<16x128xf32> -> vector<16x128xf32>
    %12 = arith.mulf %5, %11 : vector<16x128xf32>
    %c0_7 = arith.constant 0 : index
    %c0_8 = arith.constant 0 : index
    %c0_9 = arith.constant 0 : index
    %13 = vector.load %arg4[%c0_7, %c0_8, %c0_9] : memref<2x1x128xf32, #tpu.memory_space<vmem>>, vector<1x1x128xf32>
    %14 = vector.shape_cast %13 : vector<1x1x128xf32> to vector<1x128xf32>
    %c0_10 = arith.constant 0 : index
    %c0_11 = arith.constant 0 : index
    %c0_12 = arith.constant 0 : index
    %15 = vector.load %arg5[%c0_10, %c0_11, %c0_12] : memref<2x1x128xf32, #tpu.memory_space<vmem>>, vector<1x1x128xf32>
    %16 = vector.shape_cast %15 : vector<1x1x128xf32> to vector<1x128xf32>
    %cst_13 = arith.constant dense<0.000000e+00> : vector<16xf32>
    %17 = vector.multi_reduction <add>, %12, %cst_13 [1] : vector<16x128xf32> to vector<16xf32>
    %18 = vector.shape_cast %17 : vector<16xf32> to vector<16x1xf32>
    %cst_14 = arith.constant 1.280000e+02 : f32
    %19 = vector.broadcast %cst_14 : f32 to vector<16x1xf32>
    %20 = arith.divf %18, %19 : vector<16x1xf32>
    %21 = vector.broadcast %20 : vector<16x1xf32> to vector<16x128xf32>
    %22 = arith.subf %12, %21 : vector<16x128xf32>
    %23 = arith.mulf %22, %22 : vector<16x128xf32>
    %cst_15 = arith.constant dense<0.000000e+00> : vector<16xf32>
    %24 = vector.multi_reduction <add>, %23, %cst_15 [1] : vector<16x128xf32> to vector<16xf32>
    %25 = vector.shape_cast %24 : vector<16xf32> to vector<16x1xf32>
    %cst_16 = arith.constant 1.280000e+02 : f32
    %26 = vector.broadcast %cst_16 : f32 to vector<16x1xf32>
    %27 = arith.divf %25, %26 : vector<16x1xf32>
    %cst_17 = arith.constant 9.99999974E-6 : f32
    %28 = vector.broadcast %cst_17 : f32 to vector<16x1xf32>
    %29 = arith.addf %27, %28 : vector<16x1xf32>
    %30 = math.rsqrt %29 : vector<16x1xf32>
    %31 = vector.broadcast %30 : vector<16x1xf32> to vector<16x128xf32>
    %32 = arith.mulf %22, %31 : vector<16x128xf32>
    %33 = vector.broadcast %14 : vector<1x128xf32> to vector<16x128xf32>
    %34 = arith.mulf %32, %33 : vector<16x128xf32>
    %35 = vector.broadcast %16 : vector<1x128xf32> to vector<16x128xf32>
    %36 = arith.addf %34, %35 : vector<16x128xf32>
    %37 = arith.truncf %36 : vector<16x128xf32> to vector<16x128xbf16>
    %c0_18 = arith.constant 0 : index
    %c0_19 = arith.constant 0 : index
    %c0_20 = arith.constant 0 : index
    %38 = vector.load %arg6[%c0_18, %c0_19, %c0_20] : memref<2x128x128xbf16, #tpu.memory_space<vmem>>, vector<1x128x128xbf16>
    %39 = vector.shape_cast %38 : vector<1x128x128xbf16> to vector<128x128xbf16>
    %cst_21 = arith.constant dense<0.000000e+00> : vector<16x128xf32>
    %40 = tpu.matmul %37, %39, %cst_21 {dimension_numbers = #tpu.dot_dimension_numbers<[1], [0], [0], [1], [0, 0, 1, 1], [], []>} : vector<16x128xbf16>, vector<128x128xbf16>, vector<16x128xf32> -> vector<16x128xf32>
    %cst_22 = arith.constant 0.000000e+00 : f32
    %41 = vector.broadcast %cst_22 : f32 to vector<16x128xf32>
    %42 = arith.subf %41, %40 : vector<16x128xf32>
    %43 = math.exp %42 : vector<16x128xf32>
    %cst_23 = arith.constant 1.000000e+00 : f32
    %44 = vector.broadcast %cst_23 : f32 to vector<16x128xf32>
    %45 = arith.addf %44, %43 : vector<16x128xf32>
    %46 = tpu.reciprocal %45 {approx = true} : vector<16x128xf32> -> vector<16x128xf32>
    %47 = arith.mulf %40, %46 : vector<16x128xf32>
    %48 = arith.truncf %47 : vector<16x128xf32> to vector<16x128xbf16>
    %c0_24 = arith.constant 0 : index
    %c0_25 = arith.constant 0 : index
    %c0_26 = arith.constant 0 : index
    %49 = vector.load %arg7[%c0_24, %c0_25, %c0_26] : memref<2x128x128xbf16, #tpu.memory_space<vmem>>, vector<1x128x128xbf16>
    %50 = vector.shape_cast %49 : vector<1x128x128xbf16> to vector<128x128xbf16>
    %cst_27 = arith.constant dense<0.000000e+00> : vector<16x128xf32>
    %51 = tpu.matmul %48, %50, %cst_27 {dimension_numbers = #tpu.dot_dimension_numbers<[1], [0], [0], [1], [0, 0, 1, 1], [], []>} : vector<16x128xbf16>, vector<128x128xbf16>, vector<16x128xf32> -> vector<16x128xf32>
    %52 = arith.addf %12, %51 : vector<16x128xf32>
    %c0_28 = arith.constant 0 : index
    %c0_29 = arith.constant 0 : index
    %c0_30 = arith.constant 0 : index
    %53 = vector.load %arg8[%c0_28, %c0_29, %c0_30] : memref<2x1x128xf32, #tpu.memory_space<vmem>>, vector<1x1x128xf32>
    %54 = vector.shape_cast %53 : vector<1x1x128xf32> to vector<1x128xf32>
    %c0_31 = arith.constant 0 : index
    %c0_32 = arith.constant 0 : index
    %c0_33 = arith.constant 0 : index
    %55 = vector.load %arg9[%c0_31, %c0_32, %c0_33] : memref<2x1x128xf32, #tpu.memory_space<vmem>>, vector<1x1x128xf32>
    %56 = vector.shape_cast %55 : vector<1x1x128xf32> to vector<1x128xf32>
    %cst_34 = arith.constant dense<0.000000e+00> : vector<16xf32>
    %57 = vector.multi_reduction <add>, %52, %cst_34 [1] : vector<16x128xf32> to vector<16xf32>
    %58 = vector.shape_cast %57 : vector<16xf32> to vector<16x1xf32>
    %cst_35 = arith.constant 1.280000e+02 : f32
    %59 = vector.broadcast %cst_35 : f32 to vector<16x1xf32>
    %60 = arith.divf %58, %59 : vector<16x1xf32>
    %61 = vector.broadcast %60 : vector<16x1xf32> to vector<16x128xf32>
    %62 = arith.subf %52, %61 : vector<16x128xf32>
    %63 = arith.mulf %62, %62 : vector<16x128xf32>
    %cst_36 = arith.constant dense<0.000000e+00> : vector<16xf32>
    %64 = vector.multi_reduction <add>, %63, %cst_36 [1] : vector<16x128xf32> to vector<16xf32>
    %65 = vector.shape_cast %64 : vector<16xf32> to vector<16x1xf32>
    %cst_37 = arith.constant 1.280000e+02 : f32
    %66 = vector.broadcast %cst_37 : f32 to vector<16x1xf32>
    %67 = arith.divf %65, %66 : vector<16x1xf32>
    %cst_38 = arith.constant 9.99999974E-6 : f32
    %68 = vector.broadcast %cst_38 : f32 to vector<16x1xf32>
    %69 = arith.addf %67, %68 : vector<16x1xf32>
    %70 = math.rsqrt %69 : vector<16x1xf32>
    %71 = vector.broadcast %70 : vector<16x1xf32> to vector<16x128xf32>
    %72 = arith.mulf %62, %71 : vector<16x128xf32>
    %73 = vector.broadcast %54 : vector<1x128xf32> to vector<16x128xf32>
    %74 = arith.mulf %72, %73 : vector<16x128xf32>
    %75 = vector.broadcast %56 : vector<1x128xf32> to vector<16x128xf32>
    %76 = arith.addf %74, %75 : vector<16x128xf32>
    %c1 = arith.constant 1 : index
    %c0_39 = arith.constant 0 : index
    %c0_40 = arith.constant 0 : index
    %77 = vector.load %arg4[%c1, %c0_39, %c0_40] : memref<2x1x128xf32, #tpu.memory_space<vmem>>, vector<1x1x128xf32>
    %78 = vector.shape_cast %77 : vector<1x1x128xf32> to vector<1x128xf32>
    %c1_41 = arith.constant 1 : index
    %c0_42 = arith.constant 0 : index
    %c0_43 = arith.constant 0 : index
    %79 = vector.load %arg5[%c1_41, %c0_42, %c0_43] : memref<2x1x128xf32, #tpu.memory_space<vmem>>, vector<1x1x128xf32>
    %80 = vector.shape_cast %79 : vector<1x1x128xf32> to vector<1x128xf32>
    %cst_44 = arith.constant dense<0.000000e+00> : vector<16xf32>
    %81 = vector.multi_reduction <add>, %76, %cst_44 [1] : vector<16x128xf32> to vector<16xf32>
    %82 = vector.shape_cast %81 : vector<16xf32> to vector<16x1xf32>
    %cst_45 = arith.constant 1.280000e+02 : f32
    %83 = vector.broadcast %cst_45 : f32 to vector<16x1xf32>
    %84 = arith.divf %82, %83 : vector<16x1xf32>
    %85 = vector.broadcast %84 : vector<16x1xf32> to vector<16x128xf32>
    %86 = arith.subf %76, %85 : vector<16x128xf32>
    %87 = arith.mulf %86, %86 : vector<16x128xf32>
    %cst_46 = arith.constant dense<0.000000e+00> : vector<16xf32>
    %88 = vector.multi_reduction <add>, %87, %cst_46 [1] : vector<16x128xf32> to vector<16xf32>
    %89 = vector.shape_cast %88 : vector<16xf32> to vector<16x1xf32>
    %cst_47 = arith.constant 1.280000e+02 : f32
    %90 = vector.broadcast %cst_47 : f32 to vector<16x1xf32>
    %91 = arith.divf %89, %90 : vector<16x1xf32>
    %cst_48 = arith.constant 9.99999974E-6 : f32
    %92 = vector.broadcast %cst_48 : f32 to vector<16x1xf32>
    %93 = arith.addf %91, %92 : vector<16x1xf32>
    %94 = math.rsqrt %93 : vector<16x1xf32>
    %95 = vector.broadcast %94 : vector<16x1xf32> to vector<16x128xf32>
    %96 = arith.mulf %86, %95 : vector<16x128xf32>
    %97 = vector.broadcast %78 : vector<1x128xf32> to vector<16x128xf32>
    %98 = arith.mulf %96, %97 : vector<16x128xf32>
    %99 = vector.broadcast %80 : vector<1x128xf32> to vector<16x128xf32>
    %100 = arith.addf %98, %99 : vector<16x128xf32>
    %101 = arith.truncf %100 : vector<16x128xf32> to vector<16x128xbf16>
    %c1_49 = arith.constant 1 : index
    %c0_50 = arith.constant 0 : index
    %c0_51 = arith.constant 0 : index
    %102 = vector.load %arg6[%c1_49, %c0_50, %c0_51] : memref<2x128x128xbf16, #tpu.memory_space<vmem>>, vector<1x128x128xbf16>
    %103 = vector.shape_cast %102 : vector<1x128x128xbf16> to vector<128x128xbf16>
    %cst_52 = arith.constant dense<0.000000e+00> : vector<16x128xf32>
    %104 = tpu.matmul %101, %103, %cst_52 {dimension_numbers = #tpu.dot_dimension_numbers<[1], [0], [0], [1], [0, 0, 1, 1], [], []>} : vector<16x128xbf16>, vector<128x128xbf16>, vector<16x128xf32> -> vector<16x128xf32>
    %cst_53 = arith.constant 0.000000e+00 : f32
    %105 = vector.broadcast %cst_53 : f32 to vector<16x128xf32>
    %106 = arith.subf %105, %104 : vector<16x128xf32>
    %107 = math.exp %106 : vector<16x128xf32>
    %cst_54 = arith.constant 1.000000e+00 : f32
    %108 = vector.broadcast %cst_54 : f32 to vector<16x128xf32>
    %109 = arith.addf %108, %107 : vector<16x128xf32>
    %110 = tpu.reciprocal %109 {approx = true} : vector<16x128xf32> -> vector<16x128xf32>
    %111 = arith.mulf %104, %110 : vector<16x128xf32>
    %112 = arith.truncf %111 : vector<16x128xf32> to vector<16x128xbf16>
    %c1_55 = arith.constant 1 : index
    %c0_56 = arith.constant 0 : index
    %c0_57 = arith.constant 0 : index
    %113 = vector.load %arg7[%c1_55, %c0_56, %c0_57] : memref<2x128x128xbf16, #tpu.memory_space<vmem>>, vector<1x128x128xbf16>
    %114 = vector.shape_cast %113 : vector<1x128x128xbf16> to vector<128x128xbf16>
    %cst_58 = arith.constant dense<0.000000e+00> : vector<16x128xf32>
    %115 = tpu.matmul %112, %114, %cst_58 {dimension_numbers = #tpu.dot_dimension_numbers<[1], [0], [0], [1], [0, 0, 1, 1], [], []>} : vector<16x128xbf16>, vector<128x128xbf16>, vector<16x128xf32> -> vector<16x128xf32>
    %116 = arith.addf %76, %115 : vector<16x128xf32>
    %c1_59 = arith.constant 1 : index
    %c0_60 = arith.constant 0 : index
    %c0_61 = arith.constant 0 : index
    %117 = vector.load %arg8[%c1_59, %c0_60, %c0_61] : memref<2x1x128xf32, #tpu.memory_space<vmem>>, vector<1x1x128xf32>
    %118 = vector.shape_cast %117 : vector<1x1x128xf32> to vector<1x128xf32>
    %c1_62 = arith.constant 1 : index
    %c0_63 = arith.constant 0 : index
    %c0_64 = arith.constant 0 : index
    %119 = vector.load %arg9[%c1_62, %c0_63, %c0_64] : memref<2x1x128xf32, #tpu.memory_space<vmem>>, vector<1x1x128xf32>
    %120 = vector.shape_cast %119 : vector<1x1x128xf32> to vector<1x128xf32>
    %cst_65 = arith.constant dense<0.000000e+00> : vector<16xf32>
    %121 = vector.multi_reduction <add>, %116, %cst_65 [1] : vector<16x128xf32> to vector<16xf32>
    %122 = vector.shape_cast %121 : vector<16xf32> to vector<16x1xf32>
    %cst_66 = arith.constant 1.280000e+02 : f32
    %123 = vector.broadcast %cst_66 : f32 to vector<16x1xf32>
    %124 = arith.divf %122, %123 : vector<16x1xf32>
    %125 = vector.broadcast %124 : vector<16x1xf32> to vector<16x128xf32>
    %126 = arith.subf %116, %125 : vector<16x128xf32>
    %127 = arith.mulf %126, %126 : vector<16x128xf32>
    %cst_67 = arith.constant dense<0.000000e+00> : vector<16xf32>
    %128 = vector.multi_reduction <add>, %127, %cst_67 [1] : vector<16x128xf32> to vector<16xf32>
    %129 = vector.shape_cast %128 : vector<16xf32> to vector<16x1xf32>
    %cst_68 = arith.constant 1.280000e+02 : f32
    %130 = vector.broadcast %cst_68 : f32 to vector<16x1xf32>
    %131 = arith.divf %129, %130 : vector<16x1xf32>
    %cst_69 = arith.constant 9.99999974E-6 : f32
    %132 = vector.broadcast %cst_69 : f32 to vector<16x1xf32>
    %133 = arith.addf %131, %132 : vector<16x1xf32>
    %134 = math.rsqrt %133 : vector<16x1xf32>
    %135 = vector.broadcast %134 : vector<16x1xf32> to vector<16x128xf32>
    %136 = arith.mulf %126, %135 : vector<16x128xf32>
    %137 = vector.broadcast %118 : vector<1x128xf32> to vector<16x128xf32>
    %138 = arith.mulf %136, %137 : vector<16x128xf32>
    %139 = vector.broadcast %120 : vector<1x128xf32> to vector<16x128xf32>
    %140 = arith.addf %138, %139 : vector<16x128xf32>
    %141 = arith.truncf %140 : vector<16x128xf32> to vector<16x128xbf16>
    %c0_70 = arith.constant 0 : index
    %c0_71 = arith.constant 0 : index
    %142 = vector.load %arg10[%c0_70, %c0_71] : memref<128x128xbf16, #tpu.memory_space<vmem>>, vector<128x128xbf16>
    %cst_72 = arith.constant dense<0.000000e+00> : vector<16x128xf32>
    %143 = tpu.matmul %141, %142, %cst_72 {dimension_numbers = #tpu.dot_dimension_numbers<[1], [0], [0], [1], [0, 0, 1, 1], [], []>} : vector<16x128xbf16>, vector<128x128xbf16>, vector<16x128xf32> -> vector<16x128xf32>
    %c0_73 = arith.constant 0 : index
    %c0_74 = arith.constant 0 : index
    %144 = vector.load %arg11[%c0_73, %c0_74] : memref<1x128xf32, #tpu.memory_space<vmem>>, vector<1x128xf32>
    %145 = vector.broadcast %144 : vector<1x128xf32> to vector<16x128xf32>
    %146 = arith.addf %143, %145 : vector<16x128xf32>
    %c0_75 = arith.constant 0 : index
    %c0_76 = arith.constant 0 : index
    %147 = vector.load %arg12[%c0_75, %c0_76] : memref<16x128xf32, #tpu.memory_space<vmem>>, vector<16x128xf32>
    tpu.vector_store %arg12[%c0_75, %c0_76], %146 {strides = array<i32>} : memref<16x128xf32, #tpu.memory_space<vmem>>, vector<16x128xf32>,
    return
  }
  func.func @transform_0(%arg0: i32) -> (i32, i32) {
    %c0_i32 = arith.constant 0 : i32
    %c0_i32_0 = arith.constant 0 : i32
    return %arg0, %c0_i32 : i32, i32
  }
  func.func @transform_1(%arg0: i32) -> (i32, i32) {
    %c0_i32 = arith.constant 0 : i32
    %c0_i32_0 = arith.constant 0 : i32
    %c0_i32_1 = arith.constant 0 : i32
    return %c0_i32, %c0_i32_0 : i32, i32
  }
  func.func @transform_2(%arg0: i32) -> (i32, i32) {
    %c0_i32 = arith.constant 0 : i32
    %c0_i32_0 = arith.constant 0 : i32
    %c0_i32_1 = arith.constant 0 : i32
    return %c0_i32, %c0_i32_0 : i32, i32
  }
  func.func @transform_3(%arg0: i32) -> (i32, i32, i32) {
    %c0_i32 = arith.constant 0 : i32
    %c0_i32_0 = arith.constant 0 : i32
    %c0_i32_1 = arith.constant 0 : i32
    %c0_i32_2 = arith.constant 0 : i32
    return %c0_i32, %c0_i32_0, %c0_i32_1 : i32, i32, i32
  }
  func.func @transform_4(%arg0: i32) -> (i32, i32, i32) {
    %c0_i32 = arith.constant 0 : i32
    %c0_i32_0 = arith.constant 0 : i32
    %c0_i32_1 = arith.constant 0 : i32
    %c0_i32_2 = arith.constant 0 : i32
    return %c0_i32, %c0_i32_0, %c0_i32_1 : i32, i32, i32
  }
  func.func @transform_5(%arg0: i32) -> (i32, i32, i32) {
    %c0_i32 = arith.constant 0 : i32
    %c0_i32_0 = arith.constant 0 : i32
    %c0_i32_1 = arith.constant 0 : i32
    %c0_i32_2 = arith.constant 0 : i32
    return %c0_i32, %c0_i32_0, %c0_i32_1 : i32, i32, i32
  }
  func.func @transform_6(%arg0: i32) -> (i32, i32, i32) {
    %c0_i32 = arith.constant 0 : i32
    %c0_i32_0 = arith.constant 0 : i32
    %c0_i32_1 = arith.constant 0 : i32
    %c0_i32_2 = arith.constant 0 : i32
    return %c0_i32, %c0_i32_0, %c0_i32_1 : i32, i32, i32
  }
  func.func @transform_7(%arg0: i32) -> (i32, i32, i32) {
    %c0_i32 = arith.constant 0 : i32
    %c0_i32_0 = arith.constant 0 : i32
    %c0_i32_1 = arith.constant 0 : i32
    %c0_i32_2 = arith.constant 0 : i32
    return %c0_i32, %c0_i32_0, %c0_i32_1 : i32, i32, i32
  }
  func.func @transform_8(%arg0: i32) -> (i32, i32, i32) {
    %c0_i32 = arith.constant 0 : i32
    %c0_i32_0 = arith.constant 0 : i32
    %c0_i32_1 = arith.constant 0 : i32
    %c0_i32_2 = arith.constant 0 : i32
    return %c0_i32, %c0_i32_0, %c0_i32_1 : i32, i32, i32
  }
  func.func @transform_9(%arg0: i32) -> (i32, i32) {
    %c0_i32 = arith.constant 0 : i32
    %c0_i32_0 = arith.constant 0 : i32
    %c0_i32_1 = arith.constant 0 : i32
    return %c0_i32, %c0_i32_0 : i32, i32
  }
  func.func @transform_10(%arg0: i32) -> (i32, i32) {
    %c0_i32 = arith.constant 0 : i32
    %c0_i32_0 = arith.constant 0 : i32
    %c0_i32_1 = arith.constant 0 : i32
    return %c0_i32, %c0_i32_0 : i32, i32
  }
  func.func @transform_11(%arg0: i32) -> (i32, i32) {
    %c0_i32 = arith.constant 0 : i32
    %c0_i32_0 = arith.constant 0 : i32
    return %arg0, %c0_i32 : i32, i32
  }
}

module attributes {stable_mosaic.version = 11 : i64} {
  func.func @encoder_kernel(%arg0: i32, %arg1: memref<16x128xbf16, #tpu.memory_space<vmem>>, %arg2: memref<128x128xbf16, #tpu.memory_space<vmem>>, %arg3: memref<1x128xf32, #tpu.memory_space<vmem>>, %arg4: memref<2x1x128xf32, #tpu.memory_space<vmem>>, %arg5: memref<2x1x128xf32, #tpu.memory_space<vmem>>, %arg6: memref<2x128x128xbf16, #tpu.memory_space<vmem>>, %arg7: memref<2x128x128xbf16, #tpu.memory_space<vmem>>, %arg8: memref<2x1x128xf32, #tpu.memory_space<vmem>>, %arg9: memref<2x1x128xf32, #tpu.memory_space<vmem>>, %arg10: memref<128x128xbf16, #tpu.memory_space<vmem>>, %arg11: memref<1x128xf32, #tpu.memory_space<vmem>>, %arg12: memref<16x128xf32, #tpu.memory_space<vmem>>) attributes {dimension_semantics = [#tpu.dimension_semantics<parallel>], iteration_bounds = array<i64: 1>, scalar_prefetch = 0 : i64, scratch_operands = 0 : i64, tpu.core_type = #tpu.core_type<tc>, window_params = [{transform_indices = @transform_0, window_bounds = array<i64: 16, 128>}, {pipeline_mode = #tpu.pipeline_mode<synchronous>, transform_indices = @transform_1, window_bounds = array<i64: 128, 128>}, {pipeline_mode = #tpu.pipeline_mode<synchronous>, transform_indices = @transform_2, window_bounds = array<i64: 1, 128>}, {pipeline_mode = #tpu.pipeline_mode<synchronous>, transform_indices = @transform_3, window_bounds = array<i64: 2, 1, 128>}, {pipeline_mode = #tpu.pipeline_mode<synchronous>, transform_indices = @transform_4, window_bounds = array<i64: 2, 1, 128>}, {pipeline_mode = #tpu.pipeline_mode<synchronous>, transform_indices = @transform_5, window_bounds = array<i64: 2, 128, 128>}, {pipeline_mode = #tpu.pipeline_mode<synchronous>, transform_indices = @transform_6, window_bounds = array<i64: 2, 128, 128>}, {pipeline_mode = #tpu.pipeline_mode<synchronous>, transform_indices = @transform_7, window_bounds = array<i64: 2, 1, 128>}, {pipeline_mode = #tpu.pipeline_mode<synchronous>, transform_indices = @transform_8, window_bounds = array<i64: 2, 1, 128>}, {pipeline_mode = #tpu.pipeline_mode<synchronous>, transform_indices = @transform_9, window_bounds = array<i64: 128, 128>}, {pipeline_mode = #tpu.pipeline_mode<synchronous>, transform_indices = @transform_10, window_bounds = array<i64: 1, 128>}, {transform_indices = @transform_11, window_bounds = array<i64: 16, 128>}]} {
    %c0 = arith.constant 0 : index
    %c0_0 = arith.constant 0 : index
    %0 = vector.load %arg1[%c0, %c0_0] : memref<16x128xbf16, #tpu.memory_space<vmem>>, vector<16x128xbf16>
    %c0_1 = arith.constant 0 : index
    %c0_2 = arith.constant 0 : index
    %1 = vector.load %arg2[%c0_1, %c0_2] : memref<128x128xbf16, #tpu.memory_space<vmem>>, vector<128x128xbf16>
    %cst = arith.constant dense<0.000000e+00> : vector<16x128xf32>
    %2 = tpu.matmul %0, %1, %cst {dimension_numbers = #tpu.dot_dimension_numbers<[1], [0], [0], [1], [0, 0, 1, 1], [], []>} : vector<16x128xbf16>, vector<128x128xbf16>, vector<16x128xf32> -> vector<16x128xf32>
    %c0_3 = arith.constant 0 : index
    %c0_4 = arith.constant 0 : index
    %3 = vector.load %arg3[%c0_3, %c0_4] : memref<1x128xf32, #tpu.memory_space<vmem>>, vector<1x128xf32>
    %4 = vector.broadcast %3 : vector<1x128xf32> to vector<16x128xf32>
    %5 = arith.addf %2, %4 : vector<16x128xf32>
    %cst_5 = arith.constant 0.000000e+00 : f32
    %6 = vector.broadcast %cst_5 : f32 to vector<16x128xf32>
    %7 = arith.subf %6, %5 : vector<16x128xf32>
    %8 = math.exp %7 : vector<16x128xf32>
    %cst_6 = arith.constant 1.000000e+00 : f32
    %9 = vector.broadcast %cst_6 : f32 to vector<16x128xf32>
    %10 = arith.addf %9, %8 : vector<16x128xf32>
    %11 = tpu.reciprocal %10 {approx = true} : vector<16x128xf32> -> vector<16x128xf32>
    %12 = arith.mulf %5, %11 : vector<16x128xf32>
    %c0_7 = arith.constant 0 : index
    %c0_8 = arith.constant 0 : index
    %c0_9 = arith.constant 0 : index
    %13 = vector.load %arg4[%c0_7, %c0_8, %c0_9] : memref<2x1x128xf32, #tpu.memory_space<vmem>>, vector<1x1x128xf32>
    %14 = vector.shape_cast %13 : vector<1x1x128xf32> to vector<1x128xf32>
    %c0_10 = arith.constant 0 : index
    %c0_11 = arith.constant 0 : index
    %c0_12 = arith.constant 0 : index
    %15 = vector.load %arg5[%c0_10, %c0_11, %c0_12] : memref<2x1x128xf32, #tpu.memory_space<vmem>>, vector<1x1x128xf32>
    %16 = vector.shape_cast %15 : vector<1x1x128xf32> to vector<1x128xf32>
    %cst_13 = arith.constant dense<0.000000e+00> : vector<16xf32>
    %17 = vector.multi_reduction <add>, %12, %cst_13 [1] : vector<16x128xf32> to vector<16xf32>
    %18 = vector.shape_cast %17 : vector<16xf32> to vector<16x1xf32>
    %cst_14 = arith.constant 1.280000e+02 : f32
    %19 = vector.broadcast %cst_14 : f32 to vector<16x1xf32>
    %20 = arith.divf %18, %19 : vector<16x1xf32>
    %21 = vector.broadcast %20 : vector<16x1xf32> to vector<16x128xf32>
    %22 = arith.subf %12, %21 : vector<16x128xf32>
    %23 = arith.mulf %22, %22 : vector<16x128xf32>
    %cst_15 = arith.constant dense<0.000000e+00> : vector<16xf32>
    %24 = vector.multi_reduction <add>, %23, %cst_15 [1] : vector<16x128xf32> to vector<16xf32>
    %25 = vector.shape_cast %24 : vector<16xf32> to vector<16x1xf32>
    %cst_16 = arith.constant 1.280000e+02 : f32
    %26 = vector.broadcast %cst_16 : f32 to vector<16x1xf32>
    %27 = arith.divf %25, %26 : vector<16x1xf32>
    %cst_17 = arith.constant 9.99999974E-6 : f32
    %28 = vector.broadcast %cst_17 : f32 to vector<16x1xf32>
    %29 = arith.addf %27, %28 : vector<16x1xf32>
    %30 = math.rsqrt %29 : vector<16x1xf32>
    %31 = vector.broadcast %30 : vector<16x1xf32> to vector<16x128xf32>
    %32 = arith.mulf %22, %31 : vector<16x128xf32>
    %33 = vector.broadcast %14 : vector<1x128xf32> to vector<16x128xf32>
    %34 = arith.mulf %32, %33 : vector<16x128xf32>
    %35 = vector.broadcast %16 : vector<1x128xf32> to vector<16x128xf32>
    %36 = arith.addf %34, %35 : vector<16x128xf32>
    %37 = arith.truncf %36 : vector<16x128xf32> to vector<16x128xbf16>
    %c0_18 = arith.constant 0 : index
    %c0_19 = arith.constant 0 : index
    %c0_20 = arith.constant 0 : index
    %38 = vector.load %arg6[%c0_18, %c0_19, %c0_20] : memref<2x128x128xbf16, #tpu.memory_space<vmem>>, vector<1x128x128xbf16>
    %39 = vector.shape_cast %38 : vector<1x128x128xbf16> to vector<128x128xbf16>
    %cst_21 = arith.constant dense<0.000000e+00> : vector<16x128xf32>
    %40 = tpu.matmul %37, %39, %cst_21 {dimension_numbers = #tpu.dot_dimension_numbers<[1], [0], [0], [1], [0, 0, 1, 1], [], []>} : vector<16x128xbf16>, vector<128x128xbf16>, vector<16x128xf32> -> vector<16x128xf32>
    %cst_22 = arith.constant 0.000000e+00 : f32
    %41 = vector.broadcast %cst_22 : f32 to vector<16x128xf32>
    %42 = arith.subf %41, %40 : vector<16x128xf32>
    %43 = math.exp %42 : vector<16x128xf32>
    %cst_23 = arith.constant 1.000000e+00 : f32
    %44 = vector.broadcast %cst_23 : f32 to vector<16x128xf32>
    %45 = arith.addf %44, %43 : vector<16x128xf32>
    %46 = tpu.reciprocal %45 {approx = true} : vector<16x128xf32> -> vector<16x128xf32>
    %47 = arith.mulf %40, %46 : vector<16x128xf32>
    %48 = arith.truncf %47 : vector<16x128xf32> to vector<16x128xbf16>
    %c0_24 = arith.constant 0 : index
    %c0_25 = arith.constant 0 : index
    %c0_26 = arith.constant 0 : index
    %49 = vector.load %arg7[%c0_24, %c0_25, %c0_26] : memref<2x128x128xbf16, #tpu.memory_space<vmem>>, vector<1x128x128xbf16>
    %50 = vector.shape_cast %49 : vector<1x128x128xbf16> to vector<128x128xbf16>
    %cst_27 = arith.constant dense<0.000000e+00> : vector<16x128xf32>
    %51 = tpu.matmul %48, %50, %cst_27 {dimension_numbers = #tpu.dot_dimension_numbers<[1], [0], [0], [1], [0, 0, 1, 1], [], []>} : vector<16x128xbf16>, vector<128x128xbf16>, vector<16x128xf32> -> vector<16x128xf32>
    %52 = arith.addf %12, %51 : vector<16x128xf32>
    %c0_28 = arith.constant 0 : index
    %c0_29 = arith.constant 0 : index
    %c0_30 = arith.constant 0 : index
    %53 = vector.load %arg8[%c0_28, %c0_29, %c0_30] : memref<2x1x128xf32, #tpu.memory_space<vmem>>, vector<1x1x128xf32>
    %54 = vector.shape_cast %53 : vector<1x1x128xf32> to vector<1x128xf32>
    %c0_31 = arith.constant 0 : index
    %c0_32 = arith.constant 0 : index
    %c0_33 = arith.constant 0 : index
    %55 = vector.load %arg9[%c0_31, %c0_32, %c0_33] : memref<2x1x128xf32, #tpu.memory_space<vmem>>, vector<1x1x128xf32>
    %56 = vector.shape_cast %55 : vector<1x1x128xf32> to vector<1x128xf32>
    %cst_34 = arith.constant dense<0.000000e+00> : vector<16xf32>
    %57 = vector.multi_reduction <add>, %52, %cst_34 [1] : vector<16x128xf32> to vector<16xf32>
    %58 = vector.shape_cast %57 : vector<16xf32> to vector<16x1xf32>
    %cst_35 = arith.constant 1.280000e+02 : f32
    %59 = vector.broadcast %cst_35 : f32 to vector<16x1xf32>
    %60 = arith.divf %58, %59 : vector<16x1xf32>
    %61 = vector.broadcast %60 : vector<16x1xf32> to vector<16x128xf32>
    %62 = arith.subf %52, %61 : vector<16x128xf32>
    %63 = arith.mulf %62, %62 : vector<16x128xf32>
    %cst_36 = arith.constant dense<0.000000e+00> : vector<16xf32>
    %64 = vector.multi_reduction <add>, %63, %cst_36 [1] : vector<16x128xf32> to vector<16xf32>
    %65 = vector.shape_cast %64 : vector<16xf32> to vector<16x1xf32>
    %cst_37 = arith.constant 1.280000e+02 : f32
    %66 = vector.broadcast %cst_37 : f32 to vector<16x1xf32>
    %67 = arith.divf %65, %66 : vector<16x1xf32>
    %cst_38 = arith.constant 9.99999974E-6 : f32
    %68 = vector.broadcast %cst_38 : f32 to vector<16x1xf32>
    %69 = arith.addf %67, %68 : vector<16x1xf32>
    %70 = math.rsqrt %69 : vector<16x1xf32>
    %71 = vector.broadcast %70 : vector<16x1xf32> to vector<16x128xf32>
    %72 = arith.mulf %62, %71 : vector<16x128xf32>
    %73 = vector.broadcast %54 : vector<1x128xf32> to vector<16x128xf32>
    %74 = arith.mulf %72, %73 : vector<16x128xf32>
    %75 = vector.broadcast %56 : vector<1x128xf32> to vector<16x128xf32>
    %76 = arith.addf %74, %75 : vector<16x128xf32>
    %c1 = arith.constant 1 : index
    %c0_39 = arith.constant 0 : index
    %c0_40 = arith.constant 0 : index
    %77 = vector.load %arg4[%c1, %c0_39, %c0_40] : memref<2x1x128xf32, #tpu.memory_space<vmem>>, vector<1x1x128xf32>
    %78 = vector.shape_cast %77 : vector<1x1x128xf32> to vector<1x128xf32>
    %c1_41 = arith.constant 1 : index
    %c0_42 = arith.constant 0 : index
    %c0_43 = arith.constant 0 : index
    %79 = vector.load %arg5[%c1_41, %c0_42, %c0_43] : memref<2x1x128xf32, #tpu.memory_space<vmem>>, vector<1x1x128xf32>
    %80 = vector.shape_cast %79 : vector<1x1x128xf32> to vector<1x128xf32>
    %cst_44 = arith.constant dense<0.000000e+00> : vector<16xf32>
    %81 = vector.multi_reduction <add>, %76, %cst_44 [1] : vector<16x128xf32> to vector<16xf32>
    %82 = vector.shape_cast %81 : vector<16xf32> to vector<16x1xf32>
    %cst_45 = arith.constant 1.280000e+02 : f32
    %83 = vector.broadcast %cst_45 : f32 to vector<16x1xf32>
    %84 = arith.divf %82, %83 : vector<16x1xf32>
    %85 = vector.broadcast %84 : vector<16x1xf32> to vector<16x128xf32>
    %86 = arith.subf %76, %85 : vector<16x128xf32>
    %87 = arith.mulf %86, %86 : vector<16x128xf32>
    %cst_46 = arith.constant dense<0.000000e+00> : vector<16xf32>
    %88 = vector.multi_reduction <add>, %87, %cst_46 [1] : vector<16x128xf32> to vector<16xf32>
    %89 = vector.shape_cast %88 : vector<16xf32> to vector<16x1xf32>
    %cst_47 = arith.constant 1.280000e+02 : f32
    %90 = vector.broadcast %cst_47 : f32 to vector<16x1xf32>
    %91 = arith.divf %89, %90 : vector<16x1xf32>
    %cst_48 = arith.constant 9.99999974E-6 : f32
    %92 = vector.broadcast %cst_48 : f32 to vector<16x1xf32>
    %93 = arith.addf %91, %92 : vector<16x1xf32>
    %94 = math.rsqrt %93 : vector<16x1xf32>
    %95 = vector.broadcast %94 : vector<16x1xf32> to vector<16x128xf32>
    %96 = arith.mulf %86, %95 : vector<16x128xf32>
    %97 = vector.broadcast %78 : vector<1x128xf32> to vector<16x128xf32>
    %98 = arith.mulf %96, %97 : vector<16x128xf32>
    %99 = vector.broadcast %80 : vector<1x128xf32> to vector<16x128xf32>
    %100 = arith.addf %98, %99 : vector<16x128xf32>
    %101 = arith.truncf %100 : vector<16x128xf32> to vector<16x128xbf16>
    %c1_49 = arith.constant 1 : index
    %c0_50 = arith.constant 0 : index
    %c0_51 = arith.constant 0 : index
    %102 = vector.load %arg6[%c1_49, %c0_50, %c0_51] : memref<2x128x128xbf16, #tpu.memory_space<vmem>>, vector<1x128x128xbf16>
    %103 = vector.shape_cast %102 : vector<1x128x128xbf16> to vector<128x128xbf16>
    %cst_52 = arith.constant dense<0.000000e+00> : vector<16x128xf32>
    %104 = tpu.matmul %101, %103, %cst_52 {dimension_numbers = #tpu.dot_dimension_numbers<[1], [0], [0], [1], [0, 0, 1, 1], [], []>} : vector<16x128xbf16>, vector<128x128xbf16>, vector<16x128xf32> -> vector<16x128xf32>
    %cst_53 = arith.constant 0.000000e+00 : f32
    %105 = vector.broadcast %cst_53 : f32 to vector<16x128xf32>
    %106 = arith.subf %105, %104 : vector<16x128xf32>
    %107 = math.exp %106 : vector<16x128xf32>
    %cst_54 = arith.constant 1.000000e+00 : f32
    %108 = vector.broadcast %cst_54 : f32 to vector<16x128xf32>
    %109 = arith.addf %108, %107 : vector<16x128xf32>
    %110 = tpu.reciprocal %109 {approx = true} : vector<16x128xf32> -> vector<16x128xf32>
    %111 = arith.mulf %104, %110 : vector<16x128xf32>
    %112 = arith.truncf %111 : vector<16x128xf32> to vector<16x128xbf16>
    %c1_55 = arith.constant 1 : index
    %c0_56 = arith.constant 0 : index
    %c0_57 = arith.constant 0 : index
    %113 = vector.load %arg7[%c1_55, %c0_56, %c0_57] : memref<2x128x128xbf16, #tpu.memory_space<vmem>>, vector<1x128x128xbf16>
    %114 = vector.shape_cast %113 : vector<1x128x128xbf16> to vector<128x128xbf16>
    %cst_58 = arith.constant dense<0.000000e+00> : vector<16x128xf32>
    %115 = tpu.matmul %112, %114, %cst_58 {dimension_numbers = #tpu.dot_dimension_numbers<[1], [0], [0], [1], [0, 0, 1, 1], [], []>} : vector<16x128xbf16>, vector<128x128xbf16>, vector<16x128xf32> -> vector<16x128xf32>
    %116 = arith.addf %76, %115 : vector<16x128xf32>
    %c1_59 = arith.constant 1 : index
    %c0_60 = arith.constant 0 : index
    %c0_61 = arith.constant 0 : index
    %117 = vector.load %arg8[%c1_59, %c0_60, %c0_61] : memref<2x1x128xf32, #tpu.memory_space<vmem>>, vector<1x1x128xf32>
    %118 = vector.shape_cast %117 : vector<1x1x128xf32> to vector<1x128xf32>
    %c1_62 = arith.constant 1 : index
    %c0_63 = arith.constant 0 : index
    %c0_64 = arith.constant 0 : index
    %119 = vector.load %arg9[%c1_62, %c0_63, %c0_64] : memref<2x1x128xf32, #tpu.memory_space<vmem>>, vector<1x1x128xf32>
    %120 = vector.shape_cast %119 : vector<1x1x128xf32> to vector<1x128xf32>
    %cst_65 = arith.constant dense<0.000000e+00> : vector<16xf32>
    %121 = vector.multi_reduction <add>, %116, %cst_65 [1] : vector<16x128xf32> to vector<16xf32>
    %122 = vector.shape_cast %121 : vector<16xf32> to vector<16x1xf32>
    %cst_66 = arith.constant 1.280000e+02 : f32
    %123 = vector.broadcast %cst_66 : f32 to vector<16x1xf32>
    %124 = arith.divf %122, %123 : vector<16x1xf32>
    %125 = vector.broadcast %124 : vector<16x1xf32> to vector<16x128xf32>
    %126 = arith.subf %116, %125 : vector<16x128xf32>
    %127 = arith.mulf %126, %126 : vector<16x128xf32>
    %cst_67 = arith.constant dense<0.000000e+00> : vector<16xf32>
    %128 = vector.multi_reduction <add>, %127, %cst_67 [1] : vector<16x128xf32> to vector<16xf32>
    %129 = vector.shape_cast %128 : vector<16xf32> to vector<16x1xf32>
    %cst_68 = arith.constant 1.280000e+02 : f32
    %130 = vector.broadcast %cst_68 : f32 to vector<16x1xf32>
    %131 = arith.divf %129, %130 : vector<16x1xf32>
    %cst_69 = arith.constant 9.99999974E-6 : f32
    %132 = vector.broadcast %cst_69 : f32 to vector<16x1xf32>
    %133 = arith.addf %131, %132 : vector<16x1xf32>
    %134 = math.rsqrt %133 : vector<16x1xf32>
    %135 = vector.broadcast %134 : vector<16x1xf32> to vector<16x128xf32>
    %136 = arith.mulf %126, %135 : vector<16x128xf32>
    %137 = vector.broadcast %118 : vector<1x128xf32> to vector<16x128xf32>
    %138 = arith.mulf %136, %137 : vector<16x128xf32>
    %139 = vector.broadcast %120 : vector<1x128xf32> to vector<16x128xf32>
    %140 = arith.addf %138, %139 : vector<16x128xf32>
    %141 = arith.truncf %140 : vector<16x128xf32> to vector<16x128xbf16>
    %c0_70 = arith.constant 0 : index
    %c0_71 = arith.constant 0 : index
    %142 = vector.load %arg10[%c0_70, %c0_71] : memref<128x128xbf16, #tpu.memory_space<vmem>>, vector<128x128xbf16>
    %cst_72 = arith.constant dense<0.000000e+00> : vector<16x128xf32>
    %143 = tpu.matmul %141, %142, %cst_72 {dimension_numbers = #tpu.dot_dimension_numbers<[1], [0], [0], [1], [0, 0, 1, 1], [], []>} : vector<16x128xbf16>, vector<128x128xbf16>, vector<16x128xf32> -> vector<16x128xf32>
    %c0_73 = arith.constant 0 : index
    %c0_74 = arith.constant 0 : index
    %144 = vector.load %arg11[%c0_73, %c0_74] : memref<1x128xf32, #tpu.memory_space<vmem>>, vector<1x128xf32>
    %145 = vector.broadcast %144 : vector<1x128xf32> to vector<16x128xf32>
    %146 = arith.addf %143, %145 : vector<16x128xf32>
    %c0_75 = arith.constant 0 : index
    %c0_76 = arith.constant 0 : index
    %147 = vector.load %arg12[%c0_75, %c0_76] : memref<16x128xf32, #tpu.memory_space<vmem>>, vector<16x128xf32>
    tpu.vector_store %arg12[%c0_75, %c0_76], %146 {strides = array<i32>} : memref<16x128xf32, #tpu.memory_space<vmem>>, vector<16x128xf32>,
    return
  }
  func.func @transform_0(%arg0: i32) -> (i32, i32) {
    %c0_i32 = arith.constant 0 : i32
    %c0_i32_0 = arith.constant 0 : i32
    return %arg0, %c0_i32 : i32, i32
  }
  func.func @transform_1(%arg0: i32) -> (i32, i32) {
    %c0_i32 = arith.constant 0 : i32
    %c0_i32_0 = arith.constant 0 : i32
    %c0_i32_1 = arith.constant 0 : i32
    return %c0_i32, %c0_i32_0 : i32, i32
  }
  func.func @transform_2(%arg0: i32) -> (i32, i32) {
    %c0_i32 = arith.constant 0 : i32
    %c0_i32_0 = arith.constant 0 : i32
    %c0_i32_1 = arith.constant 0 : i32
    return %c0_i32, %c0_i32_0 : i32, i32
  }
  func.func @transform_3(%arg0: i32) -> (i32, i32, i32) {
    %c0_i32 = arith.constant 0 : i32
    %c0_i32_0 = arith.constant 0 : i32
    %c0_i32_1 = arith.constant 0 : i32
    %c0_i32_2 = arith.constant 0 : i32
    return %c0_i32, %c0_i32_0, %c0_i32_1 : i32, i32, i32
  }
  func.func @transform_4(%arg0: i32) -> (i32, i32, i32) {
    %c0_i32 = arith.constant 0 : i32
    %c0_i32_0 = arith.constant 0 : i32
    %c0_i32_1 = arith.constant 0 : i32
    %c0_i32_2 = arith.constant 0 : i32
    return %c0_i32, %c0_i32_0, %c0_i32_1 : i32, i32, i32
  }
  func.func @transform_5(%arg0: i32) -> (i32, i32, i32) {
    %c0_i32 = arith.constant 0 : i32
    %c0_i32_0 = arith.constant 0 : i32
    %c0_i32_1 = arith.constant 0 : i32
    %c0_i32_2 = arith.constant 0 : i32
    return %c0_i32, %c0_i32_0, %c0_i32_1 : i32, i32, i32
  }
  func.func @transform_6(%arg0: i32) -> (i32, i32, i32) {
    %c0_i32 = arith.constant 0 : i32
    %c0_i32_0 = arith.constant 0 : i32
    %c0_i32_1 = arith.constant 0 : i32
    %c0_i32_2 = arith.constant 0 : i32
    return %c0_i32, %c0_i32_0, %c0_i32_1 : i32, i32, i32
  }
  func.func @transform_7(%arg0: i32) -> (i32, i32, i32) {
    %c0_i32 = arith.constant 0 : i32
    %c0_i32_0 = arith.constant 0 : i32
    %c0_i32_1 = arith.constant 0 : i32
    %c0_i32_2 = arith.constant 0 : i32
    return %c0_i32, %c0_i32_0, %c0_i32_1 : i32, i32, i32
  }
  func.func @transform_8(%arg0: i32) -> (i32, i32, i32) {
    %c0_i32 = arith.constant 0 : i32
    %c0_i32_0 = arith.constant 0 : i32
    %c0_i32_1 = arith.constant 0 : i32
    %c0_i32_2 = arith.constant 0 : i32
    return %c0_i32, %c0_i32_0, %c0_i32_1 : i32, i32, i32
  }
  func.func @transform_9(%arg0: i32) -> (i32, i32) {
    %c0_i32 = arith.constant 0 : i32
    %c0_i32_0 = arith.constant 0 : i32
    %c0_i32_1 = arith.constant 0 : i32
    return %c0_i32, %c0_i32_0 : i32, i32
  }
  func.func @transform_10(%arg0: i32) -> (i32, i32) {
    %c0_i32 = arith.constant 0 : i32
    %c0_i32_0 = arith.constant 0 : i32
    %c0_i32_1 = arith.constant 0 : i32
    return %c0_i32, %c0_i32_0 : i32, i32
  }
  func.func @transform_11(%arg0: i32) -> (i32, i32) {
    %c0_i32 = arith.constant 0 : i32
    %c0_i32_0 = arith.constant 0 : i32
    return %arg0, %c0_i32 : i32, i32
  }
}

</mosaic_0001>

<bundles_post_ra>
// kernel: tpu_custom_call.1
= control target key start
LH: loop header
LB: loop body
LE: loop exit
PB: predicated region body
PF: predicated region fallthrough
CT: control target
= control target key end

     0   :  { %16 = vsyncpa [#allocation3], 0  ;;  %s1754_s0 = inlined_call_operand.hbm [shape: bf16[16,128], index: 0, kind: input, shape index: {}]   ;;  %s1755_s1 = inlined_call_operand.hbm [shape: bf16[128,128], index: 1, kind: input, shape index: {}]   ;;  %s1756_s2 = inlined_call_operand.vmem [shape: f32[1,128], index: 2, kind: input, shape index: {}]   ;;  %s1757_s3 = inlined_call_operand.vmem [shape: f32[2,1,128], index: 3, kind: input, shape index: {}]   ;;  %s1758_s4 = inlined_call_operand.vmem [shape: f32[2,1,128], index: 4, kind: input, shape index: {}]   ;;  %s1759_s5 = inlined_call_operand.hbm [shape: bf16[2,128,128], index: 5, kind: input, shape index: {}]   ;;  %s1760_s6 = inlined_call_operand.hbm [shape: bf16[2,128,128], index: 6, kind: input, shape index: {}]   ;;  %s1761_s7 = inlined_call_operand.vmem [shape: f32[2,1,128], index: 7, kind: input, shape index: {}]   ;;  %s1762_s8 = inlined_call_operand.vmem [shape: f32[2,1,128], index: 8, kind: input, shape index: {}]   ;;  %s1763_s9 = inlined_call_operand.hbm [shape: bf16[128,128], index: 9, kind: input, shape index: {}]   ;;  %s1764_s10 = inlined_call_operand.vmem [shape: f32[1,128], index: 10, kind: input, shape index: {}]   ;;  %s1765_s11 = inlined_call_operand.hbm [shape: f32[16,128], index: 11, kind: output, shape index: {}]  }
   0x1   :  { %17 = vsyncpa [#allocation6], 0 }
   0x2   :  { %18 = vsyncpa [#allocation9], 0 }
   0x3   :  { %19 = vsyncpa [#allocation4], 0  ;;  %s1471_s17 = smov [#allocation5]   ;;  %s1472_s19 = smov [#allocation8]  }
   0x4   :  { %s37_s18 = sshll.u32 %s1471_s17, 4  ;;  %s67_s20 = sshll.u32 %s1472_s19, 4  ;;  %s38_s18 = int_to_ptr.vmem [resolvable:$true] %s37_s18  ;;  %s1543_s20 = int_to_ptr.vmem [resolvable:$true] %s67_s20 }
   0x5   :  { %s1331_s23 = scalar_lea.hbm %s1755_s1, 1024 }
   0x6   :  { %p1332_p0 = scmp.ne.s32.totalorder %s1755_s1, %s1331_s23  ;;  %p1335_p1 = scmp.lt.u32.totalorder %s1331_s23, %s1755_s1 }
   0x8   :  { %p1337_p2 = pnand %p1335_p1, %p1332_p0 }
   0xa   :  { %1340 = shalt.err (!%p1337_p2)
}
   0xb   :  { %s1341_s28 = scalar_lea.vmem %s38_s18, 1024  ;;  %p1346_p4 = scmp.lt.s32.totalorder %s38_s18, %s38_s18 }
   0xc   :  { %p1342_p3 = scmp.ne.s32.totalorder %s38_s18, %s1341_s28  ;;  %p1347_p5 = scmp.lt.s32.totalorder %s1341_s28, %s1341_s28 }
   0xe   :  { %p1348_p6 = por %p1347_p5, %p1346_p4 }
  0x10   :  { %p1349_p7 = pnand %p1348_p6, %p1342_p3 }
  0x12   :  { %1352 = shalt.err (!%p1349_p7)
}
  0x13   :  { %s1473_s29 = smov 64   ;;  %s1474_s30 = smov 4  }
  0x14   :  { %43 = dma.hbm_to_vmem [thread:$0]  %s1755_s1, 1024, %s38_s18, [#allocation6], %s1473_s29, %s1473_s29, %s1474_s30  }
  0x15   :  { %s1353_s16 = scalar_lea.hbm %s1760_s6, 2048 }
  0x16   :  { %p1354_p8 = scmp.ne.s32.totalorder %s1760_s6, %s1353_s16  ;;  %p1357_p9 = scmp.lt.u32.totalorder %s1353_s16, %s1760_s6 }
  0x18   :  { %p1359_p10 = pnand %p1357_p9, %p1354_p8 }
  0x1a   :  { %1362 = shalt.err (!%p1359_p10)
}
  0x1b   :  { %s1363_s23 = scalar_lea.vmem %s1543_s20, 2048  ;;  %p1368_p12 = scmp.lt.s32.totalorder %s1543_s20, %s1543_s20 }
  0x1c   :  { %p1364_p11 = scmp.ne.s32.totalorder %s1543_s20, %s1363_s23  ;;  %p1369_p13 = scmp.lt.s32.totalorder %s1363_s23, %s1363_s23 }
  0x1e   :  { %p1370_p0 = por %p1369_p13, %p1368_p12 }
  0x20   :  { %p1371_p1 = pnand %p1370_p0, %p1364_p11 }
  0x22   :  { %1374 = shalt.err (!%p1371_p1)
}
  0x23   :  { %73 = dma.hbm_to_vmem [thread:$0]  %s1760_s6, 2048, %s1543_s20, [#allocation9], %s1473_s29, %s1473_s29, %s1474_s30  }
  0x24   :  { %s1475_s24 = smov [#allocation2]   ;;  %s1476_s26 = smov [#allocation7]  }
  0x25   :  { %s25_s25 = sshll.u32 %s1475_s24, 4  ;;  %s55_s27 = sshll.u32 %s1476_s26, 4  ;;  %s26_s25 = int_to_ptr.vmem [resolvable:$true] %s25_s25  ;;  %s1580_s27 = int_to_ptr.vmem [resolvable:$true] %s55_s27 }
  0x26   :  { %s1375_s13 = scalar_lea.hbm %s1754_s0, 128 }
  0x27   :  { %p1376_p2 = scmp.ne.s32.totalorder %s1754_s0, %s1375_s13  ;;  %p1379_p3 = scmp.lt.u32.totalorder %s1375_s13, %s1754_s0 }
  0x29   :  { %p1381_p4 = pnand %p1379_p3, %p1376_p2 }
  0x2b   :  { %1384 = shalt.err (!%p1381_p4)
}
  0x2c   :  { %s1385_s6 = scalar_lea.vmem %s26_s25, 128  ;;  %p1390_p6 = scmp.lt.s32.totalorder %s26_s25, %s26_s25 }
  0x2d   :  { %p1386_p5 = scmp.ne.s32.totalorder %s26_s25, %s1385_s6  ;;  %p1391_p7 = scmp.lt.s32.totalorder %s1385_s6, %s1385_s6 }
  0x2f   :  { %p1392_p8 = por %p1391_p7, %p1390_p6 }
  0x31   :  { %p1393_p9 = pnand %p1392_p8, %p1386_p5 }
  0x33   :  { %1396 = shalt.err (!%p1393_p9)
}
  0x34   :  { %31 = dma.hbm_to_vmem [thread:$0]  %s1754_s0, 128, %s26_s25, [#allocation3], %s1473_s29, %s1473_s29, %s1474_s30  }
  0x35   :  { %s1397_s23 = scalar_lea.hbm %s1759_s5, 2048 }
  0x36   :  { %p1398_p10 = scmp.ne.s32.totalorder %s1759_s5, %s1397_s23  ;;  %p1401_p11 = scmp.lt.u32.totalorder %s1397_s23, %s1759_s5 }
  0x38   :  { %p1403_p12 = pnand %p1401_p11, %p1398_p10 }
  0x3a   :  { %1406 = shalt.err (!%p1403_p12)
}
  0x3b   :  { %s1407_s28 = scalar_lea.vmem %s1580_s27, 2048  ;;  %p1412_p0 = scmp.lt.s32.totalorder %s1580_s27, %s1580_s27 }
  0x3c   :  { %p1408_p13 = scmp.ne.s32.totalorder %s1580_s27, %s1407_s28  ;;  %p1413_p1 = scmp.lt.s32.totalorder %s1407_s28, %s1407_s28 }
  0x3e   :  { %p1414_p2 = por %p1413_p1, %p1412_p0 }
  0x40   :  { %p1415_p3 = pnand %p1414_p2, %p1408_p13 }
  0x42   :  { %1418 = shalt.err (!%p1415_p3)
}
  0x43   :  { %61 = dma.hbm_to_vmem [thread:$0]  %s1759_s5, 2048, %s1580_s27, [#allocation6], %s1473_s29, %s1473_s29, %s1474_s30  }
  0x44   :  { %s1477_s12 = smov [#allocation10]   ;;  %s1419_s16 = scalar_lea.hbm %s1763_s9, 1024 }
  0x45   :  { %s83_s13 = sshll.u32 %s1477_s12, 4  ;;  %p1420_p4 = scmp.ne.s32.totalorder %s1763_s9, %s1419_s16  ;;  %s84_s13 = int_to_ptr.vmem [resolvable:$true] %s83_s13 }
  0x46   :  { %p1423_p5 = scmp.lt.u32.totalorder %s1419_s16, %s1763_s9 }
  0x48   :  { %p1425_p6 = pnand %p1423_p5, %p1420_p4 }
  0x4a   :  { %1428 = shalt.err (!%p1425_p6)
}
  0x4b   :  { %s1429_s21 = scalar_lea.vmem %s84_s13, 1024  ;;  %p1434_p8 = scmp.lt.s32.totalorder %s84_s13, %s84_s13 }
  0x4c   :  { %p1430_p7 = scmp.ne.s32.totalorder %s84_s13, %s1429_s21  ;;  %p1435_p9 = scmp.lt.s32.totalorder %s1429_s21, %s1429_s21 }
  0x4e   :  { %p1436_p10 = por %p1435_p9, %p1434_p8 }
  0x50   :  { %p1437_p11 = pnand %p1436_p10, %p1430_p7 }
  0x52   :  { %1440 = shalt.err (!%p1437_p11)
}
  0x53   :  { %89 = dma.hbm_to_vmem [thread:$0]  %s1763_s9, 1024, %s84_s13, [#allocation9], %s1473_s29, %s1473_s29, %s1474_s30  }
  0x54   :  { %1463 = dma.done.wait [#allocation3], 128  }
  0x55   :  { %1464 = vsyncadd [#allocation3], 4294967168 }
  0x56   :  { %1465 = dma.done.wait [#allocation6], 3072  }
  0x57   :  { %1466 = vsyncadd [#allocation6], 4294964224 }
  0x58   :  { %1467 = dma.done.wait [#allocation9], 3072  }
  0x59   :  { %1468 = vsyncadd [#allocation9], 4294964224  ;;  %v1478_v0 = vmov 0.0   ;;  %vm1479_vm0 = vmmov 0   ;;  %v1242_v1 = vld [vmem:[#allocation5] sm:$0xff]   ;;  %v1243_v2 = vld [vmem:[#allocation5 + $0x8] sm:$0xff]  }
  0x5a   :  { %1110 = vmatprep.subr.bf16.mxu0 %v1478_v0  ;;  %1126 = vmatprep.mubr.msk.bf16.mxu0 %vm1479_vm0, %v1478_v0  ;;  %v1244_v3 = vld [vmem:[#allocation5 + $0x10] sm:$0xff]   ;;  %v1245_v4 = vld [vmem:[#allocation5 + $0x18] sm:$0xff]   ;;  %v1246_v5 = vld [vmem:[#allocation5 + $0x20] sm:$0xff]   ;;  %s1480_s17 = smov [#allocation11]  }
  0x5b   :  { %1130 = vmatprep.subr.bf16.mxu1 %v1478_v0  ;;  %1146 = vmatprep.mubr.msk.bf16.mxu1 %vm1479_vm0, %v1478_v0  ;;  %v1247_v6 = vld [vmem:[#allocation5 + $0x28] sm:$0xff]   ;;  %v1248_v7 = vld [vmem:[#allocation5 + $0x30] sm:$0xff]   ;;  %v1249_v8 = vld [vmem:[#allocation5 + $0x38] sm:$0xff]   ;;  %s979_s6 = sshll.u32 %s1480_s17, 4  ;;  %s980_s6 = int_to_ptr.vmem [resolvable:$true] %s979_s6 }
  0x5c   :  { %1111 = vmatpush3.bf16.msra.mxu0 %v1242_v1  ;;  %v1250_v9 = vld [vmem:[#allocation2] sm:$0xff]   ;;  %v1251_v29 = vld [vmem:[#allocation7] sm:$0xff]   ;;  %v1252_v38 = vld [vmem:[#allocation7 + $0x8] sm:$0xff]   ;;  %p1446_p13 = scmp.lt.s32.totalorder %s980_s6, %s980_s6 }
  0x5d   :  { %1112 = vmatprep.subr.bf16.mxu0 %v1478_v0  ;;  %v993_v10 = vld [vmem:[%s1756_s2] ss:$0 sm:$0xff]  ;;  %1131 = vmatpush3.bf16.msra.mxu1 %v1251_v29  ;;  %v1253_v39 = vld [vmem:[#allocation7 + $0x10] sm:$0xff]   ;;  %v1255_v41 = vld [vmem:[#allocation7 + $0x20] sm:$0xff]  }
  0x5e   :  { %1132 = vmatprep.subr.bf16.mxu1 %v1478_v0  ;;  %v1254_v40 = vld [vmem:[#allocation7 + $0x18] sm:$0xff]   ;;  %v1256_v42 = vld [vmem:[#allocation7 + $0x28] sm:$0xff]   ;;  %v1257_v43 = vld [vmem:[#allocation7 + $0x30] sm:$0xff]  }
  0x5f   :  { %v1258_v44 = vld [vmem:[#allocation7 + $0x38] sm:$0xff]   ;;  %v1259_v62 = vld [vmem:[#allocation8] sm:$0xff]   ;;  %v1260_v63 = vld [vmem:[#allocation8 + $0x8] sm:$0xff]  }
  0x60   :  { %1113 = vmatpush3.bf16.msra.mxu0 %v1243_v2  ;;  %v1003_v53 = vld [vmem:[%s1757_s3] ss:$0 sm:$0xff]  ;;  %v1261_v1 = vld [vmem:[#allocation8 + $0x10] sm:$0xff]  }
  0x61   :  { %1114 = vmatprep.subr.bf16.mxu0 %v1478_v0  ;;  %1133 = vmatpush3.bf16.msra.mxu1 %v1252_v38  ;;  %v1004_v57 = vld [vmem:[%s1758_s4] ss:$0 sm:$0xff] }
  0x62   :  { %1134 = vmatprep.subr.bf16.mxu1 %v1478_v0  ;;  %v1262_v2 = vld [vmem:[#allocation8 + $0x18] sm:$0xff]  }
  0x64   :  { %1115 = vmatpush3.bf16.msra.mxu0 %v1244_v3  ;;  %v1263_v3 = vld [vmem:[#allocation8 + $0x20] sm:$0xff]  }
  0x65   :  { %1116 = vmatprep.subr.bf16.mxu0 %v1478_v0  ;;  %1135 = vmatpush3.bf16.msra.mxu1 %v1253_v39 }
  0x66   :  { %1136 = vmatprep.subr.bf16.mxu1 %v1478_v0 }
  0x68   :  { %1117 = vmatpush3.bf16.msra.mxu0 %v1245_v4  ;;  %v1264_v4 = vld [vmem:[#allocation8 + $0x28] sm:$0xff]  }
  0x69   :  { %1118 = vmatprep.subr.bf16.mxu0 %v1478_v0  ;;  %1137 = vmatpush3.bf16.msra.mxu1 %v1254_v40 }
  0x6a   :  { %1138 = vmatprep.subr.bf16.mxu1 %v1478_v0 }
  0x6c   :  { %1119 = vmatpush3.bf16.msra.mxu0 %v1246_v5  ;;  %v1265_v5 = vld [vmem:[#allocation8 + $0x30] sm:$0xff]  }
  0x6d   :  { %1120 = vmatprep.subr.bf16.mxu0 %v1478_v0  ;;  %1139 = vmatpush3.bf16.msra.mxu1 %v1255_v41 }
  0x6e   :  { %1140 = vmatprep.subr.bf16.mxu1 %v1478_v0 }
  0x70   :  { %1121 = vmatpush3.bf16.msra.mxu0 %v1247_v6  ;;  %v1266_v6 = vld [vmem:[#allocation8 + $0x38] sm:$0xff]  }
  0x71   :  { %1122 = vmatprep.subr.bf16.mxu0 %v1478_v0  ;;  %1141 = vmatpush3.bf16.msra.mxu1 %v1256_v42 }
  0x72   :  { %1142 = vmatprep.subr.bf16.mxu1 %v1478_v0 }
  0x74   :  { %1123 = vmatpush3.bf16.msra.mxu0 %v1248_v7 }
  0x75   :  { %1124 = vmatprep.subr.bf16.mxu0 %v1478_v0  ;;  %1143 = vmatpush3.bf16.msra.mxu1 %v1257_v43 }
  0x76   :  { %1144 = vmatprep.subr.bf16.mxu1 %v1478_v0 }
  0x78   :  { %1125 = vmatpush3.bf16.msra.mxu0 %v1249_v8 }
  0x79   :  { %1150 = vmatprep.subr.bf16.mxu0 %v1478_v0  ;;  %1145 = vmatpush3.bf16.msra.mxu1 %v1258_v44 }
  0x7a   :  { %1170 = vmatprep.subr.bf16.mxu1 %v1478_v0 }
  0x7b   :  { %1127 = vmatmul.mubr.bf16.vlgmr.msra.gmra.mrb[0].mxu0 %v1250_v9 }
  0x7c   :  { %1166 = vmatprep.mubr.msk.bf16.mxu0 %vm1479_vm0, %v1478_v0  ;;  %1151 = vmatpush3.bf16.msra.mxu0 %v1259_v62 }
  0x7d   :  { %1152 = vmatprep.subr.bf16.mxu0 %v1478_v0 }
  0x80   :  { %1153 = vmatpush3.bf16.msra.mxu0 %v1260_v63 }
  0x81   :  { %1154 = vmatprep.subr.bf16.mxu0 %v1478_v0 }
  0x84   :  { %1155 = vmatpush3.bf16.msra.mxu0 %v1261_v1  ;;  %v1269_v1 = vld [vmem:[#allocation7 + $0x50] sm:$0xff]  }
  0x85   :  { %1156 = vmatprep.subr.bf16.mxu0 %v1478_v0 }
  0x88   :  { %1157 = vmatpush3.bf16.msra.mxu0 %v1262_v2  ;;  %v1270_v2 = vld [vmem:[#allocation7 + $0x58] sm:$0xff]  }
  0x89   :  { %1158 = vmatprep.subr.bf16.mxu0 %v1478_v0 }
  0x8c   :  { %1159 = vmatpush3.bf16.msra.mxu0 %v1263_v3  ;;  %v1271_v3 = vld [vmem:[#allocation7 + $0x60] sm:$0xff]  }
  0x8d   :  { %1160 = vmatprep.subr.bf16.mxu0 %v1478_v0 }
  0x90   :  { %1161 = vmatpush3.bf16.msra.mxu0 %v1264_v4  ;;  %v1272_v4 = vld [vmem:[#allocation7 + $0x68] sm:$0xff]  }
  0x91   :  { %1162 = vmatprep.subr.bf16.mxu0 %v1478_v0 }
  0x94   :  { %1163 = vmatpush3.bf16.msra.mxu0 %v1265_v5  ;;  %v1273_v5 = vld [vmem:[#allocation7 + $0x70] sm:$0xff]  }
  0x95   :  { %1164 = vmatprep.subr.bf16.mxu0 %v1478_v0 }
  0x98   :  { %1165 = vmatpush3.bf16.msra.mxu0 %v1266_v6  ;;  %v1274_v6 = vld [vmem:[#allocation7 + $0x78] sm:$0xff]  }
  0x99   :  { %1190 = vmatprep.subr.bf16.mxu0 %v1478_v0 }
 0x14e   :  { %v221_v11 = vpop.f32.mrb[0].mxu0 }
 0x14f   :  { %v222_v12 = vadd.f32 %v993_v10, %v221_v11  ;;  %v1128_v13 = vpop.f32.mrb[1].mxu0 }
 0x150   :  { %v224_v14 = vpop.f32.mrb[2].mxu0 }
 0x151   :  { %v228_v15 = vsub.f32 0.0, %v222_v12  ;;  %v225_v16 = vadd.f32 %v993_v10, %v224_v14  ;;  %v1129_v17 = vpop.f32.mrb[3].mxu0 }
 0x153   :  { %v230_v18 = vmul.f32 1.442695, %v228_v15  ;;  %v229_v19 = vsub.f32 0.0, %v225_v16 }
 0x155   :  { %1291 = vpow2.f32 %v230_v18  ;;  %v232_v20 = vmul.f32 1.442695, %v229_v19 }
 0x157   :  { %1293 = vpow2.f32 %v232_v20 }
 0x15f   :  { %v1292_v21 = vpop.eup %1291 }
 0x160   :  { %v234_v22 = vadd.f32 1.0, %v1292_v21 }
 0x161   :  { %v1294_v23 = vpop.eup %1293 }
 0x162   :  { %1295 = vrcp.f32 %v234_v22  ;;  %v235_v24 = vadd.f32 1.0, %v1294_v23 }
 0x164   :  { %1297 = vrcp.f32 %v235_v24 }
 0x16c   :  { %v1296_v25 = vpop.eup %1295 }
 0x16d   :  { %v1651_v26 = vmul.f32 %v1296_v25, %v222_v12 }
 0x16e   :  { %v1298_v27 = vpop.eup %1297 }
 0x16f   :  { %242 = vadd.xlane.f32.xlu0 %v1651_v26  ;;  %v1654_v28 = vmul.f32 %v1298_v27, %v225_v16 }
 0x173   :  { %244 = vadd.xlane.f32.xlu0 %v1654_v28 }
 0x1fc   :  { %v243_v30 = vpop.xlane.xlu0 %242 }
 0x1fd   :  { %v247_v31 = vmul.f32 0.0078125, %v243_v30 }
 0x1ff   :  { %v249_v32 = vsub.f32 %v1651_v26, %v247_v31 }
 0x200   :  { %v245_v33 = vpop.xlane.xlu0 %244 }
 0x201   :  { %v248_v34 = vmul.f32 0.0078125, %v245_v33  ;;  %v251_v35 = vmul.f32 %v249_v32, %v249_v32 }
 0x203   :  { %v250_v36 = vsub.f32 %v1654_v28, %v248_v34  ;;  %253 = vadd.xlane.f32.xlu1 %v251_v35 }
 0x205   :  { %v252_v37 = vmul.f32 %v250_v36, %v250_v36 }
 0x207   :  { %255 = vadd.xlane.f32.xlu1 %v252_v37 }
 0x290   :  { %v254_v45 = vpop.xlane.xlu1 %253 }
 0x291   :  { %v257_v46 = vmul.f32 0.0078125, %v254_v45  ;;  %v1021_v45 = vld [vmem:[%s1761_s7] ss:$0 sm:$0xff] }
 0x293   :  { %v259_v47 = vadd.f32 1e-05, %v257_v46 }
 0x294   :  { %v256_v48 = vpop.xlane.xlu1 %255 }
 0x295   :  { %1299 = vrsqrt.f32 %v259_v47  ;;  %v258_v49 = vmul.f32 0.0078125, %v256_v48  ;;  %v1022_v48 = vld [vmem:[%s1762_s8] ss:$0 sm:$0xff] }
 0x297   :  { %v260_v50 = vadd.f32 1e-05, %v258_v49 }
 0x299   :  { %1301 = vrsqrt.f32 %v260_v50 }
 0x29f   :  { %v1300_v51 = vpop.eup %1299 }
 0x2a0   :  { %v263_v52 = vmul.f32 %v1300_v51, %v249_v32 }
 0x2a2   :  { %v271_v56 = vmul.f32 %v1003_v53, %v263_v52 }
 0x2a3   :  { %v1302_v54 = vpop.eup %1301 }
 0x2a4   :  { %v264_v55 = vmul.f32 %v1302_v54, %v250_v36  ;;  %v279_v59 = vadd.f32 %v1004_v57, %v271_v56  ;;  %v1267_v54 = vld [vmem:[#allocation7 + $0x40] sm:$0xff]  }
 0x2a6   :  { %v272_v58 = vmul.f32 %v1003_v53, %v264_v55  ;;  %v1268_v55 = vld [vmem:[#allocation7 + $0x48] sm:$0xff]  }
 0x2a8   :  { %v280_v60 = vadd.f32 %v1004_v57, %v272_v58 }
 0x2aa   :  { %v281_v61 = vpack.c.bf16 %v280_v60, %v279_v59 }
 0x2ac   :  { %1147 = vmatmul.mubr.bf16.vlgmr.msra.gmra.mrb[0].mxu1 %v281_v61 }
 0x2ad   :  { %1186 = vmatprep.mubr.msk.bf16.mxu1 %vm1479_vm0, %v1478_v0  ;;  %1171 = vmatpush3.bf16.msra.mxu1 %v1267_v54 }
 0x2ae   :  { %1172 = vmatprep.subr.bf16.mxu1 %v1478_v0 }
 0x2b1   :  { %1173 = vmatpush3.bf16.msra.mxu1 %v1268_v55 }
 0x2b2   :  { %1174 = vmatprep.subr.bf16.mxu1 %v1478_v0 }
 0x2b5   :  { %1175 = vmatpush3.bf16.msra.mxu1 %v1269_v1 }
 0x2b6   :  { %1176 = vmatprep.subr.bf16.mxu1 %v1478_v0 }
 0x2b9   :  { %1177 = vmatpush3.bf16.msra.mxu1 %v1270_v2  ;;  %v1285_v2 = vld [vmem:[#allocation10 + $0x10] sm:$0xff]  }
 0x2ba   :  { %1178 = vmatprep.subr.bf16.mxu1 %v1478_v0 }
 0x2bd   :  { %1179 = vmatpush3.bf16.msra.mxu1 %v1271_v3  ;;  %v1286_v3 = vld [vmem:[#allocation10 + $0x18] sm:$0xff]  }
 0x2be   :  { %1180 = vmatprep.subr.bf16.mxu1 %v1478_v0 }
 0x2c1   :  { %1181 = vmatpush3.bf16.msra.mxu1 %v1272_v4  ;;  %v1287_v4 = vld [vmem:[#allocation10 + $0x20] sm:$0xff]  }
 0x2c2   :  { %1182 = vmatprep.subr.bf16.mxu1 %v1478_v0 }
 0x2c5   :  { %1183 = vmatpush3.bf16.msra.mxu1 %v1273_v5  ;;  %v1288_v5 = vld [vmem:[#allocation10 + $0x28] sm:$0xff]  }
 0x2c6   :  { %1184 = vmatprep.subr.bf16.mxu1 %v1478_v0 }
 0x2c9   :  { %1185 = vmatpush3.bf16.msra.mxu1 %v1274_v6  ;;  %v1289_v6 = vld [vmem:[#allocation10 + $0x30] sm:$0xff]  }
 0x2ca   :  { %1210 = vmatprep.subr.bf16.mxu1 %v1478_v0 }
 0x37f   :  { %v380_v7 = vpop.f32.mrb[0].mxu1 }
 0x380   :  { %v387_v8 = vsub.f32 0.0, %v380_v7  ;;  %v1148_v9 = vpop.f32.mrb[1].mxu1 }
 0x381   :  { %v383_v10 = vpop.f32.mrb[2].mxu1 }
 0x382   :  { %v389_v11 = vmul.f32 1.442695, %v387_v8  ;;  %v388_v12 = vsub.f32 0.0, %v383_v10  ;;  %v1149_v13 = vpop.f32.mrb[3].mxu1 }
 0x384   :  { %1303 = vpow2.f32 %v389_v11  ;;  %v391_v14 = vmul.f32 1.442695, %v388_v12 }
 0x386   :  { %1305 = vpow2.f32 %v391_v14  ;;  %v1025_v14 = vld [vmem:[%s1757_s3 + $0x1] ss:$0 sm:$0xff] }
 0x38e   :  { %v1304_v15 = vpop.eup %1303 }
 0x38f   :  { %v393_v16 = vadd.f32 1.0, %v1304_v15 }
 0x390   :  { %v1306_v17 = vpop.eup %1305 }
 0x391   :  { %1307 = vrcp.f32 %v393_v16  ;;  %v394_v18 = vadd.f32 1.0, %v1306_v17 }
 0x393   :  { %1309 = vrcp.f32 %v394_v18 }
 0x39b   :  { %v1308_v19 = vpop.eup %1307 }
 0x39c   :  { %v397_v21 = vmul.f32 %v1308_v19, %v380_v7  ;;  %v1026_v19 = vld [vmem:[%s1758_s4 + $0x1] ss:$0 sm:$0xff] }
 0x39d   :  { %v1310_v20 = vpop.eup %1309 }
 0x39e   :  { %v398_v22 = vmul.f32 %v1310_v20, %v383_v10 }
 0x3a0   :  { %v399_v23 = vpack.c.bf16 %v398_v22, %v397_v21 }
 0x3a2   :  { %1167 = vmatmul.mubr.bf16.vlgmr.msra.gmra.mrb[4].mxu0 %v399_v23 }
 0x3a3   :  { %1206 = vmatprep.mubr.msk.bf16.mxu0 %vm1479_vm0, %v1478_v0 }
 0x475   :  { %v498_v24 = vpop.f32.mrb[4].mxu0 }
 0x476   :  { %v505_v25 = vadd.f32 %v498_v24, %v1651_v26  ;;  %v1168_v27 = vpop.f32.mrb[5].mxu0  ;;  %v1275_v24 = vld [vmem:[#allocation8 + $0x40] sm:$0xff]  }
 0x477   :  { %v501_v29 = vpop.f32.mrb[6].mxu0  ;;  %1191 = vmatpush3.bf16.msra.mxu0 %v1275_v24  ;;  %v1277_v27 = vld [vmem:[#allocation8 + $0x50] sm:$0xff]   ;;  %v1047_v24 = vld [vmem:[%s1764_s10] ss:$0 sm:$0xff] }
 0x478   :  { %v506_v30 = vadd.f32 %v501_v29, %v1654_v28  ;;  %509 = vadd.xlane.f32.xlu0 %v505_v25  ;;  %v1169_v31 = vpop.f32.mrb[7].mxu0  ;;  %1192 = vmatprep.subr.bf16.mxu0 %v1478_v0  ;;  %v1278_v29 = vld [vmem:[#allocation8 + $0x58] sm:$0xff]  }
 0x479   :  { %v1280_v31 = vld [vmem:[#allocation8 + $0x68] sm:$0xff]  }
 0x47a   :  { %511 = vadd.xlane.f32.xlu1 %v506_v30 }
 0x505   :  { %v510_v32 = vpop.xlane.xlu0 %509 }
 0x506   :  { %v513_v33 = vmul.f32 0.0078125, %v510_v32  ;;  %v1281_v32 = vld [vmem:[#allocation8 + $0x70] sm:$0xff]  }
 0x507   :  { %v512_v34 = vpop.xlane.xlu1 %511 }
 0x508   :  { %v515_v35 = vsub.f32 %v505_v25, %v513_v33  ;;  %v514_v36 = vmul.f32 0.0078125, %v512_v34  ;;  %v1276_v25 = vld [vmem:[#allocation8 + $0x48] sm:$0xff]   ;;  %v1282_v33 = vld [vmem:[#allocation8 + $0x78] sm:$0xff]  }
 0x509   :  { %1193 = vmatpush3.bf16.msra.mxu0 %v1276_v25 }
 0x50a   :  { %v516_v37 = vsub.f32 %v506_v30, %v514_v36  ;;  %v517_v38 = vmul.f32 %v515_v35, %v515_v35  ;;  %1194 = vmatprep.subr.bf16.mxu0 %v1478_v0  ;;  %v1279_v30 = vld [vmem:[#allocation8 + $0x60] sm:$0xff]  }
 0x50c   :  { %519 = vadd.xlane.f32.xlu0 %v517_v38  ;;  %v518_v39 = vmul.f32 %v516_v37, %v516_v37 }
 0x50d   :  { %1195 = vmatpush3.bf16.msra.mxu0 %v1277_v27 }
 0x50e   :  { %521 = vadd.xlane.f32.xlu1 %v518_v39  ;;  %1196 = vmatprep.subr.bf16.mxu0 %v1478_v0 }
 0x511   :  { %1197 = vmatpush3.bf16.msra.mxu0 %v1278_v29 }
 0x512   :  { %1198 = vmatprep.subr.bf16.mxu0 %v1478_v0 }
 0x515   :  { %1199 = vmatpush3.bf16.msra.mxu0 %v1279_v30 }
 0x516   :  { %1200 = vmatprep.subr.bf16.mxu0 %v1478_v0 }
 0x519   :  { %1201 = vmatpush3.bf16.msra.mxu0 %v1280_v31 }
 0x51a   :  { %1202 = vmatprep.subr.bf16.mxu0 %v1478_v0 }
 0x51d   :  { %1203 = vmatpush3.bf16.msra.mxu0 %v1281_v32 }
 0x51e   :  { %1204 = vmatprep.subr.bf16.mxu0 %v1478_v0 }
 0x521   :  { %1205 = vmatpush3.bf16.msra.mxu0 %v1282_v33 }
 0x599   :  { %v520_v40 = vpop.xlane.xlu0 %519 }
 0x59a   :  { %v523_v41 = vmul.f32 0.0078125, %v520_v40 }
 0x59b   :  { %v522_v26 = vpop.xlane.xlu1 %521 }
 0x59c   :  { %v525_v42 = vadd.f32 1e-05, %v523_v41  ;;  %v524_v43 = vmul.f32 0.0078125, %v522_v26 }
 0x59e   :  { %1311 = vrsqrt.f32 %v525_v42  ;;  %v526_v28 = vadd.f32 1e-05, %v524_v43 }
 0x5a0   :  { %1313 = vrsqrt.f32 %v526_v28 }
 0x5a8   :  { %v1312_v44 = vpop.eup %1311 }
 0x5a9   :  { %v529_v46 = vmul.f32 %v1312_v44, %v515_v35 }
 0x5aa   :  { %v1314_v47 = vpop.eup %1313 }
 0x5ab   :  { %v537_v49 = vmul.f32 %v1021_v45, %v529_v46  ;;  %v530_v50 = vmul.f32 %v1314_v47, %v516_v37 }
 0x5ad   :  { %v1693_v51 = vadd.f32 %v1022_v48, %v537_v49  ;;  %v538_v52 = vmul.f32 %v1021_v45, %v530_v50 }
 0x5af   :  { %551 = vadd.xlane.f32.xlu0 %v1693_v51  ;;  %v1696_v53 = vadd.f32 %v1022_v48, %v538_v52 }
 0x5b1   :  { %553 = vadd.xlane.f32.xlu1 %v1696_v53 }
 0x63c   :  { %v552_v56 = vpop.xlane.xlu0 %551 }
 0x63d   :  { %v555_v57 = vmul.f32 0.0078125, %v552_v56 }
 0x63e   :  { %v554_v58 = vpop.xlane.xlu1 %553 }
 0x63f   :  { %v557_v59 = vsub.f32 %v1693_v51, %v555_v57  ;;  %v556_v60 = vmul.f32 0.0078125, %v554_v58  ;;  %v1283_v57 = vld [vmem:[#allocation10] sm:$0xff]   ;;  %v1284_v58 = vld [vmem:[#allocation10 + $0x8] sm:$0xff]  }
 0x641   :  { %v558_v61 = vsub.f32 %v1696_v53, %v556_v60  ;;  %v559_v62 = vmul.f32 %v557_v59, %v557_v59 }
 0x643   :  { %561 = vadd.xlane.f32.xlu0 %v559_v62  ;;  %v560_v63 = vmul.f32 %v558_v61, %v558_v61 }
 0x645   :  { %563 = vadd.xlane.f32.xlu1 %v560_v63 }
 0x6d0   :  { %v562_v7 = vpop.xlane.xlu0 %561 }
 0x6d1   :  { %v565_v8 = vmul.f32 0.0078125, %v562_v7  ;;  %v1290_v7 = vld [vmem:[#allocation10 + $0x38] sm:$0xff]  }
 0x6d2   :  { %v564_v9 = vpop.xlane.xlu1 %563 }
 0x6d3   :  { %v567_v10 = vadd.f32 1e-05, %v565_v8  ;;  %v566_v11 = vmul.f32 0.0078125, %v564_v9 }
 0x6d5   :  { %1315 = vrsqrt.f32 %v567_v10  ;;  %v568_v12 = vadd.f32 1e-05, %v566_v11 }
 0x6d7   :  { %1317 = vrsqrt.f32 %v568_v12 }
 0x6df   :  { %v1316_v13 = vpop.eup %1315 }
 0x6e0   :  { %v571_v15 = vmul.f32 %v1316_v13, %v557_v59 }
 0x6e1   :  { %v1318_v16 = vpop.eup %1317 }
 0x6e2   :  { %v572_v17 = vmul.f32 %v1318_v16, %v558_v61  ;;  %v579_v18 = vmul.f32 %v1025_v14, %v571_v15  ;;  %v1045_v15 = vld [vmem:[%s1761_s7 + $0x1] ss:$0 sm:$0xff]  ;;  %s1441_s7 = scalar_lea.vmem %s980_s6, 256 }
 0x6e3   :  { %p1442_p12 = scmp.ne.s32.totalorder %s980_s6, %s1441_s7  ;;  %p1447_p0 = scmp.lt.s32.totalorder %s1441_s7, %s1441_s7 }
 0x6e4   :  { %v580_v20 = vmul.f32 %v1025_v14, %v572_v17  ;;  %v587_v21 = vadd.f32 %v1026_v19, %v579_v18 }
 0x6e5   :  { %p1448_p1 = por %p1447_p0, %p1446_p13 }
 0x6e6   :  { %v588_v22 = vadd.f32 %v1026_v19, %v580_v20 }
 0x6e7   :  { %p1449_p2 = pnand %p1448_p1, %p1442_p12 }
 0x6e8   :  { %v589_v23 = vpack.c.bf16 %v588_v22, %v587_v21 }
 0x6ea   :  { %1187 = vmatmul.mubr.bf16.vlgmr.msra.gmra.mrb[4].mxu1 %v589_v23 }
 0x6eb   :  { %1226 = vmatprep.mubr.msk.bf16.mxu1 %vm1479_vm0, %v1478_v0  ;;  %1211 = vmatpush3.bf16.msra.mxu1 %v1283_v57 }
 0x6ec   :  { %1212 = vmatprep.subr.bf16.mxu1 %v1478_v0 }
 0x6ef   :  { %1213 = vmatpush3.bf16.msra.mxu1 %v1284_v58 }
 0x6f0   :  { %1214 = vmatprep.subr.bf16.mxu1 %v1478_v0 }
 0x6f3   :  { %1215 = vmatpush3.bf16.msra.mxu1 %v1285_v2 }
 0x6f4   :  { %1216 = vmatprep.subr.bf16.mxu1 %v1478_v0 }
 0x6f7   :  { %1217 = vmatpush3.bf16.msra.mxu1 %v1286_v3 }
 0x6f8   :  { %1218 = vmatprep.subr.bf16.mxu1 %v1478_v0 }
 0x6fb   :  { %1219 = vmatpush3.bf16.msra.mxu1 %v1287_v4 }
 0x6fc   :  { %1220 = vmatprep.subr.bf16.mxu1 %v1478_v0 }
 0x6ff   :  { %1221 = vmatpush3.bf16.msra.mxu1 %v1288_v5 }
 0x700   :  { %1222 = vmatprep.subr.bf16.mxu1 %v1478_v0 }
 0x703   :  { %1223 = vmatpush3.bf16.msra.mxu1 %v1289_v6 }
 0x704   :  { %1224 = vmatprep.subr.bf16.mxu1 %v1478_v0  ;;  %v1046_v0 = vld [vmem:[%s1762_s8 + $0x1] ss:$0 sm:$0xff] }
 0x707   :  { %1225 = vmatpush3.bf16.msra.mxu1 %v1290_v7 }
 0x7bd   :  { %v689_v34 = vpop.f32.mrb[4].mxu1 }
 0x7be   :  { %v696_v35 = vsub.f32 0.0, %v689_v34  ;;  %v1188_v36 = vpop.f32.mrb[5].mxu1 }
 0x7bf   :  { %v692_v37 = vpop.f32.mrb[6].mxu1 }
 0x7c0   :  { %v698_v38 = vmul.f32 1.442695, %v696_v35  ;;  %v697_v39 = vsub.f32 0.0, %v692_v37  ;;  %v1189_v40 = vpop.f32.mrb[7].mxu1 }
 0x7c2   :  { %1319 = vpow2.f32 %v698_v38  ;;  %v700_v41 = vmul.f32 1.442695, %v697_v39 }
 0x7c4   :  { %1321 = vpow2.f32 %v700_v41 }
 0x7cc   :  { %v1320_v26 = vpop.eup %1319 }
 0x7cd   :  { %v702_v42 = vadd.f32 1.0, %v1320_v26 }
 0x7ce   :  { %v1322_v43 = vpop.eup %1321 }
 0x7cf   :  { %1323 = vrcp.f32 %v702_v42  ;;  %v703_v28 = vadd.f32 1.0, %v1322_v43 }
 0x7d1   :  { %1325 = vrcp.f32 %v703_v28 }
 0x7d9   :  { %v1324_v44 = vpop.eup %1323 }
 0x7da   :  { %v706_v46 = vmul.f32 %v1324_v44, %v689_v34 }
 0x7db   :  { %v1326_v45 = vpop.eup %1325 }
 0x7dc   :  { %v707_v47 = vmul.f32 %v1326_v45, %v692_v37 }
 0x7de   :  { %v708_v48 = vpack.c.bf16 %v707_v47, %v706_v46 }
 0x7e0   :  { %1207 = vmatmul.mubr.bf16.vlgmr.msra.gmra.mrb[8].mxu0 %v708_v48 }
 0x8b3   :  { %v808_v49 = vpop.f32.mrb[8].mxu0 }
 0x8b4   :  { %v815_v50 = vadd.f32 %v808_v49, %v1693_v51  ;;  %v1208_v52 = vpop.f32.mrb[9].mxu0 }
 0x8b5   :  { %v811_v54 = vpop.f32.mrb[10].mxu0 }
 0x8b6   :  { %v816_v55 = vadd.f32 %v811_v54, %v1696_v53  ;;  %821 = vadd.xlane.f32.xlu0 %v815_v50  ;;  %v1209_v56 = vpop.f32.mrb[11].mxu0 }
 0x8b8   :  { %823 = vadd.xlane.f32.xlu1 %v816_v55 }
 0x943   :  { %v822_v59 = vpop.xlane.xlu0 %821 }
 0x944   :  { %v825_v60 = vmul.f32 0.0078125, %v822_v59 }
 0x945   :  { %v824_v61 = vpop.xlane.xlu1 %823 }
 0x946   :  { %v827_v62 = vsub.f32 %v815_v50, %v825_v60  ;;  %v826_v51 = vmul.f32 0.0078125, %v824_v61 }
 0x948   :  { %v828_v63 = vsub.f32 %v816_v55, %v826_v51  ;;  %v829_v1 = vmul.f32 %v827_v62, %v827_v62 }
 0x94a   :  { %831 = vadd.xlane.f32.xlu0 %v829_v1  ;;  %v830_v53 = vmul.f32 %v828_v63, %v828_v63 }
 0x94c   :  { %833 = vadd.xlane.f32.xlu1 %v830_v53 }
 0x9d7   :  { %v832_v8 = vpop.xlane.xlu0 %831 }
 0x9d8   :  { %v835_v9 = vmul.f32 0.0078125, %v832_v8 }
 0x9d9   :  { %v834_v10 = vpop.xlane.xlu1 %833 }
 0x9da   :  { %v837_v11 = vadd.f32 1e-05, %v835_v9  ;;  %v836_v12 = vmul.f32 0.0078125, %v834_v10 }
 0x9dc   :  { %1327 = vrsqrt.f32 %v837_v11  ;;  %v838_v13 = vadd.f32 1e-05, %v836_v12 }
 0x9de   :  { %1329 = vrsqrt.f32 %v838_v13 }
 0x9e6   :  { %v1328_v14 = vpop.eup %1327 }
 0x9e7   :  { %v841_v16 = vmul.f32 %v1328_v14, %v827_v62 }
 0x9e8   :  { %v1330_v17 = vpop.eup %1329 }
 0x9e9   :  { %v842_v18 = vmul.f32 %v1330_v17, %v828_v63  ;;  %v849_v19 = vmul.f32 %v1045_v15, %v841_v16 }
 0x9eb   :  { %v850_v20 = vmul.f32 %v1045_v15, %v842_v18  ;;  %v857_v21 = vadd.f32 %v1046_v0, %v849_v19 }
 0x9ed   :  { %v858_v22 = vadd.f32 %v1046_v0, %v850_v20 }
 0x9ef   :  { %v859_v23 = vpack.c.bf16 %v858_v22, %v857_v21 }
 0x9f1   :  { %1227 = vmatmul.mubr.bf16.vlgmr.msra.gmra.mrb[8].mxu1 %v859_v23 }
 0xac4   :  { %v965_v25 = vpop.f32.mrb[8].mxu1 }
 0xac5   :  { %v966_v27 = vadd.f32 %v1047_v24, %v965_v25  ;;  %v1228_v29 = vpop.f32.mrb[9].mxu1 }
 0xac6   :  { %v968_v30 = vpop.f32.mrb[10].mxu1 }
 0xac7   :  { %972 = vst [vmem:[#allocation11] sm:$0xff] %v966_v27  ;;  %v969_v31 = vadd.f32 %v1047_v24, %v968_v30  ;;  %v1229_v32 = vpop.f32.mrb[11].mxu1 }
 0xac9   :  { %973 = vst [vmem:[#allocation11 + $0x8] sm:$0xff] %v969_v31 }
 0xaca   :  { %1452 = shalt.err (!%p1449_p2)
}
 0xacb   :  { %s1453_s20 = scalar_lea.hbm %s1765_s11, 256 }
 0xacc   :  { %p1454_p3 = scmp.ne.s32.totalorder %s1765_s11, %s1453_s20  ;;  %p1457_p4 = scmp.lt.u32.totalorder %s1453_s20, %s1765_s11 }
 0xace   :  { %p1459_p5 = pnand %p1457_p4, %p1454_p3 }
 0xad0   :  { %1462 = shalt.err (!%p1459_p5)
}
 0xad1   :  { %s1481_s9 = smov 128   ;;  %s1482_s29 = smov 8  }
 0xad2   :  { %985 = dma.vmem_to_hbm [thread:$0]  %s980_s6, 256, %s1765_s11, [#allocation4], %s1481_s9, %s1481_s9, %s1482_s29  }
 0xad3   :  { %1469 = dma.done.wait [#allocation4], 256  }
 0xad4   :  { %1470 = vsyncadd [#allocation4], 4294967040 }
 0xad5   :  { %989 = vsyncpa [#allocation3], 1 }
 0xad6   :  { %990 = vsyncpa [#allocation6], 1 }
 0xad7   :  { %991 = vsyncpa [#allocation9], 1 }
 0xad8   :  { %992 = vsyncpa [#allocation4], 1 }

// kernel: tpu_custom_call.1
= control target key start
LH: loop header
LB: loop body
LE: loop exit
PB: predicated region body
PF: predicated region fallthrough
CT: control target
= control target key end

     0   :  { %16 = vsyncpa [#allocation3], 0  ;;  %s1754_s0 = inlined_call_operand.hbm [shape: bf16[16,128], index: 0, kind: input, shape index: {}]   ;;  %s1755_s1 = inlined_call_operand.hbm [shape: bf16[128,128], index: 1, kind: input, shape index: {}]   ;;  %s1756_s2 = inlined_call_operand.vmem [shape: f32[1,128], index: 2, kind: input, shape index: {}]   ;;  %s1757_s3 = inlined_call_operand.vmem [shape: f32[2,1,128], index: 3, kind: input, shape index: {}]   ;;  %s1758_s4 = inlined_call_operand.vmem [shape: f32[2,1,128], index: 4, kind: input, shape index: {}]   ;;  %s1759_s5 = inlined_call_operand.hbm [shape: bf16[2,128,128], index: 5, kind: input, shape index: {}]   ;;  %s1760_s6 = inlined_call_operand.hbm [shape: bf16[2,128,128], index: 6, kind: input, shape index: {}]   ;;  %s1761_s7 = inlined_call_operand.vmem [shape: f32[2,1,128], index: 7, kind: input, shape index: {}]   ;;  %s1762_s8 = inlined_call_operand.vmem [shape: f32[2,1,128], index: 8, kind: input, shape index: {}]   ;;  %s1763_s9 = inlined_call_operand.hbm [shape: bf16[128,128], index: 9, kind: input, shape index: {}]   ;;  %s1764_s10 = inlined_call_operand.vmem [shape: f32[1,128], index: 10, kind: input, shape index: {}]   ;;  %s1765_s11 = inlined_call_operand.hbm [shape: f32[16,128], index: 11, kind: output, shape index: {}]  }
   0x1   :  { %17 = vsyncpa [#allocation6], 0 }
   0x2   :  { %18 = vsyncpa [#allocation9], 0 }
   0x3   :  { %19 = vsyncpa [#allocation4], 0  ;;  %s1471_s17 = smov [#allocation5]   ;;  %s1472_s19 = smov [#allocation8]  }
   0x4   :  { %s37_s18 = sshll.u32 %s1471_s17, 4  ;;  %s67_s20 = sshll.u32 %s1472_s19, 4  ;;  %s38_s18 = int_to_ptr.vmem [resolvable:$true] %s37_s18  ;;  %s1543_s20 = int_to_ptr.vmem [resolvable:$true] %s67_s20 }
   0x5   :  { %s1331_s23 = scalar_lea.hbm %s1755_s1, 1024 }
   0x6   :  { %p1332_p0 = scmp.ne.s32.totalorder %s1755_s1, %s1331_s23  ;;  %p1335_p1 = scmp.lt.u32.totalorder %s1331_s23, %s1755_s1 }
   0x8   :  { %p1337_p2 = pnand %p1335_p1, %p1332_p0 }
   0xa   :  { %1340 = shalt.err (!%p1337_p2)
}
   0xb   :  { %s1341_s28 = scalar_lea.vmem %s38_s18, 1024  ;;  %p1346_p4 = scmp.lt.s32.totalorder %s38_s18, %s38_s18 }
   0xc   :  { %p1342_p3 = scmp.ne.s32.totalorder %s38_s18, %s1341_s28  ;;  %p1347_p5 = scmp.lt.s32.totalorder %s1341_s28, %s1341_s28 }
   0xe   :  { %p1348_p6 = por %p1347_p5, %p1346_p4 }
  0x10   :  { %p1349_p7 = pnand %p1348_p6, %p1342_p3 }
  0x12   :  { %1352 = shalt.err (!%p1349_p7)
}
  0x13   :  { %s1473_s29 = smov 64   ;;  %s1474_s30 = smov 4  }
  0x14   :  { %43 = dma.hbm_to_vmem [thread:$0]  %s1755_s1, 1024, %s38_s18, [#allocation6], %s1473_s29, %s1473_s29, %s1474_s30  }
  0x15   :  { %s1353_s16 = scalar_lea.hbm %s1760_s6, 2048 }
  0x16   :  { %p1354_p8 = scmp.ne.s32.totalorder %s1760_s6, %s1353_s16  ;;  %p1357_p9 = scmp.lt.u32.totalorder %s1353_s16, %s1760_s6 }
  0x18   :  { %p1359_p10 = pnand %p1357_p9, %p1354_p8 }
  0x1a   :  { %1362 = shalt.err (!%p1359_p10)
}
  0x1b   :  { %s1363_s23 = scalar_lea.vmem %s1543_s20, 2048  ;;  %p1368_p12 = scmp.lt.s32.totalorder %s1543_s20, %s1543_s20 }
  0x1c   :  { %p1364_p11 = scmp.ne.s32.totalorder %s1543_s20, %s1363_s23  ;;  %p1369_p13 = scmp.lt.s32.totalorder %s1363_s23, %s1363_s23 }
  0x1e   :  { %p1370_p0 = por %p1369_p13, %p1368_p12 }
  0x20   :  { %p1371_p1 = pnand %p1370_p0, %p1364_p11 }
  0x22   :  { %1374 = shalt.err (!%p1371_p1)
}
  0x23   :  { %73 = dma.hbm_to_vmem [thread:$0]  %s1760_s6, 2048, %s1543_s20, [#allocation9], %s1473_s29, %s1473_s29, %s1474_s30  }
  0x24   :  { %s1475_s24 = smov [#allocation2]   ;;  %s1476_s26 = smov [#allocation7]  }
  0x25   :  { %s25_s25 = sshll.u32 %s1475_s24, 4  ;;  %s55_s27 = sshll.u32 %s1476_s26, 4  ;;  %s26_s25 = int_to_ptr.vmem [resolvable:$true] %s25_s25  ;;  %s1580_s27 = int_to_ptr.vmem [resolvable:$true] %s55_s27 }
  0x26   :  { %s1375_s13 = scalar_lea.hbm %s1754_s0, 128 }
  0x27   :  { %p1376_p2 = scmp.ne.s32.totalorder %s1754_s0, %s1375_s13  ;;  %p1379_p3 = scmp.lt.u32.totalorder %s1375_s13, %s1754_s0 }
  0x29   :  { %p1381_p4 = pnand %p1379_p3, %p1376_p2 }
  0x2b   :  { %1384 = shalt.err (!%p1381_p4)
}
  0x2c   :  { %s1385_s6 = scalar_lea.vmem %s26_s25, 128  ;;  %p1390_p6 = scmp.lt.s32.totalorder %s26_s25, %s26_s25 }
  0x2d   :  { %p1386_p5 = scmp.ne.s32.totalorder %s26_s25, %s1385_s6  ;;  %p1391_p7 = scmp.lt.s32.totalorder %s1385_s6, %s1385_s6 }
  0x2f   :  { %p1392_p8 = por %p1391_p7, %p1390_p6 }
  0x31   :  { %p1393_p9 = pnand %p1392_p8, %p1386_p5 }
  0x33   :  { %1396 = shalt.err (!%p1393_p9)
}
  0x34   :  { %31 = dma.hbm_to_vmem [thread:$0]  %s1754_s0, 128, %s26_s25, [#allocation3], %s1473_s29, %s1473_s29, %s1474_s30  }
  0x35   :  { %s1397_s23 = scalar_lea.hbm %s1759_s5, 2048 }
  0x36   :  { %p1398_p10 = scmp.ne.s32.totalorder %s1759_s5, %s1397_s23  ;;  %p1401_p11 = scmp.lt.u32.totalorder %s1397_s23, %s1759_s5 }
  0x38   :  { %p1403_p12 = pnand %p1401_p11, %p1398_p10 }
  0x3a   :  { %1406 = shalt.err (!%p1403_p12)
}
  0x3b   :  { %s1407_s28 = scalar_lea.vmem %s1580_s27, 2048  ;;  %p1412_p0 = scmp.lt.s32.totalorder %s1580_s27, %s1580_s27 }
  0x3c   :  { %p1408_p13 = scmp.ne.s32.totalorder %s1580_s27, %s1407_s28  ;;  %p1413_p1 = scmp.lt.s32.totalorder %s1407_s28, %s1407_s28 }
  0x3e   :  { %p1414_p2 = por %p1413_p1, %p1412_p0 }
  0x40   :  { %p1415_p3 = pnand %p1414_p2, %p1408_p13 }
  0x42   :  { %1418 = shalt.err (!%p1415_p3)
}
  0x43   :  { %61 = dma.hbm_to_vmem [thread:$0]  %s1759_s5, 2048, %s1580_s27, [#allocation6], %s1473_s29, %s1473_s29, %s1474_s30  }
  0x44   :  { %s1477_s12 = smov [#allocation10]   ;;  %s1419_s16 = scalar_lea.hbm %s1763_s9, 1024 }
  0x45   :  { %s83_s13 = sshll.u32 %s1477_s12, 4  ;;  %p1420_p4 = scmp.ne.s32.totalorder %s1763_s9, %s1419_s16  ;;  %s84_s13 = int_to_ptr.vmem [resolvable:$true] %s83_s13 }
  0x46   :  { %p1423_p5 = scmp.lt.u32.totalorder %s1419_s16, %s1763_s9 }
  0x48   :  { %p1425_p6 = pnand %p1423_p5, %p1420_p4 }
  0x4a   :  { %1428 = shalt.err (!%p1425_p6)
}
  0x4b   :  { %s1429_s21 = scalar_lea.vmem %s84_s13, 1024  ;;  %p1434_p8 = scmp.lt.s32.totalorder %s84_s13, %s84_s13 }
  0x4c   :  { %p1430_p7 = scmp.ne.s32.totalorder %s84_s13, %s1429_s21  ;;  %p1435_p9 = scmp.lt.s32.totalorder %s1429_s21, %s1429_s21 }
  0x4e   :  { %p1436_p10 = por %p1435_p9, %p1434_p8 }
  0x50   :  { %p1437_p11 = pnand %p1436_p10, %p1430_p7 }
  0x52   :  { %1440 = shalt.err (!%p1437_p11)
}
  0x53   :  { %89 = dma.hbm_to_vmem [thread:$0]  %s1763_s9, 1024, %s84_s13, [#allocation9], %s1473_s29, %s1473_s29, %s1474_s30  }
  0x54   :  { %1463 = dma.done.wait [#allocation3], 128  }
  0x55   :  { %1464 = vsyncadd [#allocation3], 4294967168 }
  0x56   :  { %1465 = dma.done.wait [#allocation6], 3072  }
  0x57   :  { %1466 = vsyncadd [#allocation6], 4294964224 }
  0x58   :  { %1467 = dma.done.wait [#allocation9], 3072  }
  0x59   :  { %1468 = vsyncadd [#allocation9], 4294964224  ;;  %v1478_v0 = vmov 0.0   ;;  %vm1479_vm0 = vmmov 0   ;;  %v1242_v1 = vld [vmem:[#allocation5] sm:$0xff]   ;;  %v1243_v2 = vld [vmem:[#allocation5 + $0x8] sm:$0xff]  }
  0x5a   :  { %1110 = vmatprep.subr.bf16.mxu0 %v1478_v0  ;;  %1126 = vmatprep.mubr.msk.bf16.mxu0 %vm1479_vm0, %v1478_v0  ;;  %v1244_v3 = vld [vmem:[#allocation5 + $0x10] sm:$0xff]   ;;  %v1245_v4 = vld [vmem:[#allocation5 + $0x18] sm:$0xff]   ;;  %v1246_v5 = vld [vmem:[#allocation5 + $0x20] sm:$0xff]   ;;  %s1480_s17 = smov [#allocation11]  }
  0x5b   :  { %1130 = vmatprep.subr.bf16.mxu1 %v1478_v0  ;;  %1146 = vmatprep.mubr.msk.bf16.mxu1 %vm1479_vm0, %v1478_v0  ;;  %v1247_v6 = vld [vmem:[#allocation5 + $0x28] sm:$0xff]   ;;  %v1248_v7 = vld [vmem:[#allocation5 + $0x30] sm:$0xff]   ;;  %v1249_v8 = vld [vmem:[#allocation5 + $0x38] sm:$0xff]   ;;  %s979_s6 = sshll.u32 %s1480_s17, 4  ;;  %s980_s6 = int_to_ptr.vmem [resolvable:$true] %s979_s6 }
  0x5c   :  { %1111 = vmatpush3.bf16.msra.mxu0 %v1242_v1  ;;  %v1250_v9 = vld [vmem:[#allocation2] sm:$0xff]   ;;  %v1251_v29 = vld [vmem:[#allocation7] sm:$0xff]   ;;  %v1252_v38 = vld [vmem:[#allocation7 + $0x8] sm:$0xff]   ;;  %p1446_p13 = scmp.lt.s32.totalorder %s980_s6, %s980_s6 }
  0x5d   :  { %1112 = vmatprep.subr.bf16.mxu0 %v1478_v0  ;;  %v993_v10 = vld [vmem:[%s1756_s2] ss:$0 sm:$0xff]  ;;  %1131 = vmatpush3.bf16.msra.mxu1 %v1251_v29  ;;  %v1253_v39 = vld [vmem:[#allocation7 + $0x10] sm:$0xff]   ;;  %v1255_v41 = vld [vmem:[#allocation7 + $0x20] sm:$0xff]  }
  0x5e   :  { %1132 = vmatprep.subr.bf16.mxu1 %v1478_v0  ;;  %v1254_v40 = vld [vmem:[#allocation7 + $0x18] sm:$0xff]   ;;  %v1256_v42 = vld [vmem:[#allocation7 + $0x28] sm:$0xff]   ;;  %v1257_v43 = vld [vmem:[#allocation7 + $0x30] sm:$0xff]  }
  0x5f   :  { %v1258_v44 = vld [vmem:[#allocation7 + $0x38] sm:$0xff]   ;;  %v1259_v62 = vld [vmem:[#allocation8] sm:$0xff]   ;;  %v1260_v63 = vld [vmem:[#allocation8 + $0x8] sm:$0xff]  }
  0x60   :  { %1113 = vmatpush3.bf16.msra.mxu0 %v1243_v2  ;;  %v1003_v53 = vld [vmem:[%s1757_s3] ss:$0 sm:$0xff]  ;;  %v1261_v1 = vld [vmem:[#allocation8 + $0x10] sm:$0xff]  }
  0x61   :  { %1114 = vmatprep.subr.bf16.mxu0 %v1478_v0  ;;  %1133 = vmatpush3.bf16.msra.mxu1 %v1252_v38  ;;  %v1004_v57 = vld [vmem:[%s1758_s4] ss:$0 sm:$0xff] }
  0x62   :  { %1134 = vmatprep.subr.bf16.mxu1 %v1478_v0  ;;  %v1262_v2 = vld [vmem:[#allocation8 + $0x18] sm:$0xff]  }
  0x64   :  { %1115 = vmatpush3.bf16.msra.mxu0 %v1244_v3  ;;  %v1263_v3 = vld [vmem:[#allocation8 + $0x20] sm:$0xff]  }
  0x65   :  { %1116 = vmatprep.subr.bf16.mxu0 %v1478_v0  ;;  %1135 = vmatpush3.bf16.msra.mxu1 %v1253_v39 }
  0x66   :  { %1136 = vmatprep.subr.bf16.mxu1 %v1478_v0 }
  0x68   :  { %1117 = vmatpush3.bf16.msra.mxu0 %v1245_v4  ;;  %v1264_v4 = vld [vmem:[#allocation8 + $0x28] sm:$0xff]  }
  0x69   :  { %1118 = vmatprep.subr.bf16.mxu0 %v1478_v0  ;;  %1137 = vmatpush3.bf16.msra.mxu1 %v1254_v40 }
  0x6a   :  { %1138 = vmatprep.subr.bf16.mxu1 %v1478_v0 }
  0x6c   :  { %1119 = vmatpush3.bf16.msra.mxu0 %v1246_v5  ;;  %v1265_v5 = vld [vmem:[#allocation8 + $0x30] sm:$0xff]  }
  0x6d   :  { %1120 = vmatprep.subr.bf16.mxu0 %v1478_v0  ;;  %1139 = vmatpush3.bf16.msra.mxu1 %v1255_v41 }
  0x6e   :  { %1140 = vmatprep.subr.bf16.mxu1 %v1478_v0 }
  0x70   :  { %1121 = vmatpush3.bf16.msra.mxu0 %v1247_v6  ;;  %v1266_v6 = vld [vmem:[#allocation8 + $0x38] sm:$0xff]  }
  0x71   :  { %1122 = vmatprep.subr.bf16.mxu0 %v1478_v0  ;;  %1141 = vmatpush3.bf16.msra.mxu1 %v1256_v42 }
  0x72   :  { %1142 = vmatprep.subr.bf16.mxu1 %v1478_v0 }
  0x74   :  { %1123 = vmatpush3.bf16.msra.mxu0 %v1248_v7 }
  0x75   :  { %1124 = vmatprep.subr.bf16.mxu0 %v1478_v0  ;;  %1143 = vmatpush3.bf16.msra.mxu1 %v1257_v43 }
  0x76   :  { %1144 = vmatprep.subr.bf16.mxu1 %v1478_v0 }
  0x78   :  { %1125 = vmatpush3.bf16.msra.mxu0 %v1249_v8 }
  0x79   :  { %1150 = vmatprep.subr.bf16.mxu0 %v1478_v0  ;;  %1145 = vmatpush3.bf16.msra.mxu1 %v1258_v44 }
  0x7a   :  { %1170 = vmatprep.subr.bf16.mxu1 %v1478_v0 }
  0x7b   :  { %1127 = vmatmul.mubr.bf16.vlgmr.msra.gmra.mrb[0].mxu0 %v1250_v9 }
  0x7c   :  { %1166 = vmatprep.mubr.msk.bf16.mxu0 %vm1479_vm0, %v1478_v0  ;;  %1151 = vmatpush3.bf16.msra.mxu0 %v1259_v62 }
  0x7d   :  { %1152 = vmatprep.subr.bf16.mxu0 %v1478_v0 }
  0x80   :  { %1153 = vmatpush3.bf16.msra.mxu0 %v1260_v63 }
  0x81   :  { %1154 = vmatprep.subr.bf16.mxu0 %v1478_v0 }
  0x84   :  { %1155 = vmatpush3.bf16.msra.mxu0 %v1261_v1  ;;  %v1269_v1 = vld [vmem:[#allocation7 + $0x50] sm:$0xff]  }
  0x85   :  { %1156 = vmatprep.subr.bf16.mxu0 %v1478_v0 }
  0x88   :  { %1157 = vmatpush3.bf16.msra.mxu0 %v1262_v2  ;;  %v1270_v2 = vld [vmem:[#allocation7 + $0x58] sm:$0xff]  }
  0x89   :  { %1158 = vmatprep.subr.bf16.mxu0 %v1478_v0 }
  0x8c   :  { %1159 = vmatpush3.bf16.msra.mxu0 %v1263_v3  ;;  %v1271_v3 = vld [vmem:[#allocation7 + $0x60] sm:$0xff]  }
  0x8d   :  { %1160 = vmatprep.subr.bf16.mxu0 %v1478_v0 }
  0x90   :  { %1161 = vmatpush3.bf16.msra.mxu0 %v1264_v4  ;;  %v1272_v4 = vld [vmem:[#allocation7 + $0x68] sm:$0xff]  }
  0x91   :  { %1162 = vmatprep.subr.bf16.mxu0 %v1478_v0 }
  0x94   :  { %1163 = vmatpush3.bf16.msra.mxu0 %v1265_v5  ;;  %v1273_v5 = vld [vmem:[#allocation7 + $0x70] sm:$0xff]  }
  0x95   :  { %1164 = vmatprep.subr.bf16.mxu0 %v1478_v0 }
  0x98   :  { %1165 = vmatpush3.bf16.msra.mxu0 %v1266_v6  ;;  %v1274_v6 = vld [vmem:[#allocation7 + $0x78] sm:$0xff]  }
  0x99   :  { %1190 = vmatprep.subr.bf16.mxu0 %v1478_v0 }
 0x14e   :  { %v221_v11 = vpop.f32.mrb[0].mxu0 }
 0x14f   :  { %v222_v12 = vadd.f32 %v993_v10, %v221_v11  ;;  %v1128_v13 = vpop.f32.mrb[1].mxu0 }
 0x150   :  { %v224_v14 = vpop.f32.mrb[2].mxu0 }
 0x151   :  { %v228_v15 = vsub.f32 0.0, %v222_v12  ;;  %v225_v16 = vadd.f32 %v993_v10, %v224_v14  ;;  %v1129_v17 = vpop.f32.mrb[3].mxu0 }
 0x153   :  { %v230_v18 = vmul.f32 1.442695, %v228_v15  ;;  %v229_v19 = vsub.f32 0.0, %v225_v16 }
 0x155   :  { %1291 = vpow2.f32 %v230_v18  ;;  %v232_v20 = vmul.f32 1.442695, %v229_v19 }
 0x157   :  { %1293 = vpow2.f32 %v232_v20 }
 0x15f   :  { %v1292_v21 = vpop.eup %1291 }
 0x160   :  { %v234_v22 = vadd.f32 1.0, %v1292_v21 }
 0x161   :  { %v1294_v23 = vpop.eup %1293 }
 0x162   :  { %1295 = vrcp.f32 %v234_v22  ;;  %v235_v24 = vadd.f32 1.0, %v1294_v23 }
 0x164   :  { %1297 = vrcp.f32 %v235_v24 }
 0x16c   :  { %v1296_v25 = vpop.eup %1295 }
 0x16d   :  { %v1651_v26 = vmul.f32 %v1296_v25, %v222_v12 }
 0x16e   :  { %v1298_v27 = vpop.eup %1297 }
 0x16f   :  { %242 = vadd.xlane.f32.xlu0 %v1651_v26  ;;  %v1654_v28 = vmul.f32 %v1298_v27, %v225_v16 }
 0x173   :  { %244 = vadd.xlane.f32.xlu0 %v1654_v28 }
 0x1fc   :  { %v243_v30 = vpop.xlane.xlu0 %242 }
 0x1fd   :  { %v247_v31 = vmul.f32 0.0078125, %v243_v30 }
 0x1ff   :  { %v249_v32 = vsub.f32 %v1651_v26, %v247_v31 }
 0x200   :  { %v245_v33 = vpop.xlane.xlu0 %244 }
 0x201   :  { %v248_v34 = vmul.f32 0.0078125, %v245_v33  ;;  %v251_v35 = vmul.f32 %v249_v32, %v249_v32 }
 0x203   :  { %v250_v36 = vsub.f32 %v1654_v28, %v248_v34  ;;  %253 = vadd.xlane.f32.xlu1 %v251_v35 }
 0x205   :  { %v252_v37 = vmul.f32 %v250_v36, %v250_v36 }
 0x207   :  { %255 = vadd.xlane.f32.xlu1 %v252_v37 }
 0x290   :  { %v254_v45 = vpop.xlane.xlu1 %253 }
 0x291   :  { %v257_v46 = vmul.f32 0.0078125, %v254_v45  ;;  %v1021_v45 = vld [vmem:[%s1761_s7] ss:$0 sm:$0xff] }
 0x293   :  { %v259_v47 = vadd.f32 1e-05, %v257_v46 }
 0x294   :  { %v256_v48 = vpop.xlane.xlu1 %255 }
 0x295   :  { %1299 = vrsqrt.f32 %v259_v47  ;;  %v258_v49 = vmul.f32 0.0078125, %v256_v48  ;;  %v1022_v48 = vld [vmem:[%s1762_s8] ss:$0 sm:$0xff] }
 0x297   :  { %v260_v50 = vadd.f32 1e-05, %v258_v49 }
 0x299   :  { %1301 = vrsqrt.f32 %v260_v50 }
 0x29f   :  { %v1300_v51 = vpop.eup %1299 }
 0x2a0   :  { %v263_v52 = vmul.f32 %v1300_v51, %v249_v32 }
 0x2a2   :  { %v271_v56 = vmul.f32 %v1003_v53, %v263_v52 }
 0x2a3   :  { %v1302_v54 = vpop.eup %1301 }
 0x2a4   :  { %v264_v55 = vmul.f32 %v1302_v54, %v250_v36  ;;  %v279_v59 = vadd.f32 %v1004_v57, %v271_v56  ;;  %v1267_v54 = vld [vmem:[#allocation7 + $0x40] sm:$0xff]  }
 0x2a6   :  { %v272_v58 = vmul.f32 %v1003_v53, %v264_v55  ;;  %v1268_v55 = vld [vmem:[#allocation7 + $0x48] sm:$0xff]  }
 0x2a8   :  { %v280_v60 = vadd.f32 %v1004_v57, %v272_v58 }
 0x2aa   :  { %v281_v61 = vpack.c.bf16 %v280_v60, %v279_v59 }
 0x2ac   :  { %1147 = vmatmul.mubr.bf16.vlgmr.msra.gmra.mrb[0].mxu1 %v281_v61 }
 0x2ad   :  { %1186 = vmatprep.mubr.msk.bf16.mxu1 %vm1479_vm0, %v1478_v0  ;;  %1171 = vmatpush3.bf16.msra.mxu1 %v1267_v54 }
 0x2ae   :  { %1172 = vmatprep.subr.bf16.mxu1 %v1478_v0 }
 0x2b1   :  { %1173 = vmatpush3.bf16.msra.mxu1 %v1268_v55 }
 0x2b2   :  { %1174 = vmatprep.subr.bf16.mxu1 %v1478_v0 }
 0x2b5   :  { %1175 = vmatpush3.bf16.msra.mxu1 %v1269_v1 }
 0x2b6   :  { %1176 = vmatprep.subr.bf16.mxu1 %v1478_v0 }
 0x2b9   :  { %1177 = vmatpush3.bf16.msra.mxu1 %v1270_v2  ;;  %v1285_v2 = vld [vmem:[#allocation10 + $0x10] sm:$0xff]  }
 0x2ba   :  { %1178 = vmatprep.subr.bf16.mxu1 %v1478_v0 }
 0x2bd   :  { %1179 = vmatpush3.bf16.msra.mxu1 %v1271_v3  ;;  %v1286_v3 = vld [vmem:[#allocation10 + $0x18] sm:$0xff]  }
 0x2be   :  { %1180 = vmatprep.subr.bf16.mxu1 %v1478_v0 }
 0x2c1   :  { %1181 = vmatpush3.bf16.msra.mxu1 %v1272_v4  ;;  %v1287_v4 = vld [vmem:[#allocation10 + $0x20] sm:$0xff]  }
 0x2c2   :  { %1182 = vmatprep.subr.bf16.mxu1 %v1478_v0 }
 0x2c5   :  { %1183 = vmatpush3.bf16.msra.mxu1 %v1273_v5  ;;  %v1288_v5 = vld [vmem:[#allocation10 + $0x28] sm:$0xff]  }
 0x2c6   :  { %1184 = vmatprep.subr.bf16.mxu1 %v1478_v0 }
 0x2c9   :  { %1185 = vmatpush3.bf16.msra.mxu1 %v1274_v6  ;;  %v1289_v6 = vld [vmem:[#allocation10 + $0x30] sm:$0xff]  }
 0x2ca   :  { %1210 = vmatprep.subr.bf16.mxu1 %v1478_v0 }
 0x37f   :  { %v380_v7 = vpop.f32.mrb[0].mxu1 }
 0x380   :  { %v387_v8 = vsub.f32 0.0, %v380_v7  ;;  %v1148_v9 = vpop.f32.mrb[1].mxu1 }
 0x381   :  { %v383_v10 = vpop.f32.mrb[2].mxu1 }
 0x382   :  { %v389_v11 = vmul.f32 1.442695, %v387_v8  ;;  %v388_v12 = vsub.f32 0.0, %v383_v10  ;;  %v1149_v13 = vpop.f32.mrb[3].mxu1 }
 0x384   :  { %1303 = vpow2.f32 %v389_v11  ;;  %v391_v14 = vmul.f32 1.442695, %v388_v12 }
 0x386   :  { %1305 = vpow2.f32 %v391_v14  ;;  %v1025_v14 = vld [vmem:[%s1757_s3 + $0x1] ss:$0 sm:$0xff] }
 0x38e   :  { %v1304_v15 = vpop.eup %1303 }
 0x38f   :  { %v393_v16 = vadd.f32 1.0, %v1304_v15 }
 0x390   :  { %v1306_v17 = vpop.eup %1305 }
 0x391   :  { %1307 = vrcp.f32 %v393_v16  ;;  %v394_v18 = vadd.f32 1.0, %v1306_v17 }
 0x393   :  { %1309 = vrcp.f32 %v394_v18 }
 0x39b   :  { %v1308_v19 = vpop.eup %1307 }
 0x39c   :  { %v397_v21 = vmul.f32 %v1308_v19, %v380_v7  ;;  %v1026_v19 = vld [vmem:[%s1758_s4 + $0x1] ss:$0 sm:$0xff] }
 0x39d   :  { %v1310_v20 = vpop.eup %1309 }
 0x39e   :  { %v398_v22 = vmul.f32 %v1310_v20, %v383_v10 }
 0x3a0   :  { %v399_v23 = vpack.c.bf16 %v398_v22, %v397_v21 }
 0x3a2   :  { %1167 = vmatmul.mubr.bf16.vlgmr.msra.gmra.mrb[4].mxu0 %v399_v23 }
 0x3a3   :  { %1206 = vmatprep.mubr.msk.bf16.mxu0 %vm1479_vm0, %v1478_v0 }
 0x475   :  { %v498_v24 = vpop.f32.mrb[4].mxu0 }
 0x476   :  { %v505_v25 = vadd.f32 %v498_v24, %v1651_v26  ;;  %v1168_v27 = vpop.f32.mrb[5].mxu0  ;;  %v1275_v24 = vld [vmem:[#allocation8 + $0x40] sm:$0xff]  }
 0x477   :  { %v501_v29 = vpop.f32.mrb[6].mxu0  ;;  %1191 = vmatpush3.bf16.msra.mxu0 %v1275_v24  ;;  %v1277_v27 = vld [vmem:[#allocation8 + $0x50] sm:$0xff]   ;;  %v1047_v24 = vld [vmem:[%s1764_s10] ss:$0 sm:$0xff] }
 0x478   :  { %v506_v30 = vadd.f32 %v501_v29, %v1654_v28  ;;  %509 = vadd.xlane.f32.xlu0 %v505_v25  ;;  %v1169_v31 = vpop.f32.mrb[7].mxu0  ;;  %1192 = vmatprep.subr.bf16.mxu0 %v1478_v0  ;;  %v1278_v29 = vld [vmem:[#allocation8 + $0x58] sm:$0xff]  }
 0x479   :  { %v1280_v31 = vld [vmem:[#allocation8 + $0x68] sm:$0xff]  }
 0x47a   :  { %511 = vadd.xlane.f32.xlu1 %v506_v30 }
 0x505   :  { %v510_v32 = vpop.xlane.xlu0 %509 }
 0x506   :  { %v513_v33 = vmul.f32 0.0078125, %v510_v32  ;;  %v1281_v32 = vld [vmem:[#allocation8 + $0x70] sm:$0xff]  }
 0x507   :  { %v512_v34 = vpop.xlane.xlu1 %511 }
 0x508   :  { %v515_v35 = vsub.f32 %v505_v25, %v513_v33  ;;  %v514_v36 = vmul.f32 0.0078125, %v512_v34  ;;  %v1276_v25 = vld [vmem:[#allocation8 + $0x48] sm:$0xff]   ;;  %v1282_v33 = vld [vmem:[#allocation8 + $0x78] sm:$0xff]  }
 0x509   :  { %1193 = vmatpush3.bf16.msra.mxu0 %v1276_v25 }
 0x50a   :  { %v516_v37 = vsub.f32 %v506_v30, %v514_v36  ;;  %v517_v38 = vmul.f32 %v515_v35, %v515_v35  ;;  %1194 = vmatprep.subr.bf16.mxu0 %v1478_v0  ;;  %v1279_v30 = vld [vmem:[#allocation8 + $0x60] sm:$0xff]  }
 0x50c   :  { %519 = vadd.xlane.f32.xlu0 %v517_v38  ;;  %v518_v39 = vmul.f32 %v516_v37, %v516_v37 }
 0x50d   :  { %1195 = vmatpush3.bf16.msra.mxu0 %v1277_v27 }
 0x50e   :  { %521 = vadd.xlane.f32.xlu1 %v518_v39  ;;  %1196 = vmatprep.subr.bf16.mxu0 %v1478_v0 }
 0x511   :  { %1197 = vmatpush3.bf16.msra.mxu0 %v1278_v29 }
 0x512   :  { %1198 = vmatprep.subr.bf16.mxu0 %v1478_v0 }
 0x515   :  { %1199 = vmatpush3.bf16.msra.mxu0 %v1279_v30 }
 0x516   :  { %1200 = vmatprep.subr.bf16.mxu0 %v1478_v0 }
 0x519   :  { %1201 = vmatpush3.bf16.msra.mxu0 %v1280_v31 }
 0x51a   :  { %1202 = vmatprep.subr.bf16.mxu0 %v1478_v0 }
 0x51d   :  { %1203 = vmatpush3.bf16.msra.mxu0 %v1281_v32 }
 0x51e   :  { %1204 = vmatprep.subr.bf16.mxu0 %v1478_v0 }
 0x521   :  { %1205 = vmatpush3.bf16.msra.mxu0 %v1282_v33 }
 0x599   :  { %v520_v40 = vpop.xlane.xlu0 %519 }
 0x59a   :  { %v523_v41 = vmul.f32 0.0078125, %v520_v40 }
 0x59b   :  { %v522_v26 = vpop.xlane.xlu1 %521 }
 0x59c   :  { %v525_v42 = vadd.f32 1e-05, %v523_v41  ;;  %v524_v43 = vmul.f32 0.0078125, %v522_v26 }
 0x59e   :  { %1311 = vrsqrt.f32 %v525_v42  ;;  %v526_v28 = vadd.f32 1e-05, %v524_v43 }
 0x5a0   :  { %1313 = vrsqrt.f32 %v526_v28 }
 0x5a8   :  { %v1312_v44 = vpop.eup %1311 }
 0x5a9   :  { %v529_v46 = vmul.f32 %v1312_v44, %v515_v35 }
 0x5aa   :  { %v1314_v47 = vpop.eup %1313 }
 0x5ab   :  { %v537_v49 = vmul.f32 %v1021_v45, %v529_v46  ;;  %v530_v50 = vmul.f32 %v1314_v47, %v516_v37 }
 0x5ad   :  { %v1693_v51 = vadd.f32 %v1022_v48, %v537_v49  ;;  %v538_v52 = vmul.f32 %v1021_v45, %v530_v50 }
 0x5af   :  { %551 = vadd.xlane.f32.xlu0 %v1693_v51  ;;  %v1696_v53 = vadd.f32 %v1022_v48, %v538_v52 }
 0x5b1   :  { %553 = vadd.xlane.f32.xlu1 %v1696_v53 }
 0x63c   :  { %v552_v56 = vpop.xlane.xlu0 %551 }
 0x63d   :  { %v555_v57 = vmul.f32 0.0078125, %v552_v56 }
 0x63e   :  { %v554_v58 = vpop.xlane.xlu1 %553 }
 0x63f   :  { %v557_v59 = vsub.f32 %v1693_v51, %v555_v57  ;;  %v556_v60 = vmul.f32 0.0078125, %v554_v58  ;;  %v1283_v57 = vld [vmem:[#allocation10] sm:$0xff]   ;;  %v1284_v58 = vld [vmem:[#allocation10 + $0x8] sm:$0xff]  }
 0x641   :  { %v558_v61 = vsub.f32 %v1696_v53, %v556_v60  ;;  %v559_v62 = vmul.f32 %v557_v59, %v557_v59 }
 0x643   :  { %561 = vadd.xlane.f32.xlu0 %v559_v62  ;;  %v560_v63 = vmul.f32 %v558_v61, %v558_v61 }
 0x645   :  { %563 = vadd.xlane.f32.xlu1 %v560_v63 }
 0x6d0   :  { %v562_v7 = vpop.xlane.xlu0 %561 }
 0x6d1   :  { %v565_v8 = vmul.f32 0.0078125, %v562_v7  ;;  %v1290_v7 = vld [vmem:[#allocation10 + $0x38] sm:$0xff]  }
 0x6d2   :  { %v564_v9 = vpop.xlane.xlu1 %563 }
 0x6d3   :  { %v567_v10 = vadd.f32 1e-05, %v565_v8  ;;  %v566_v11 = vmul.f32 0.0078125, %v564_v9 }
 0x6d5   :  { %1315 = vrsqrt.f32 %v567_v10  ;;  %v568_v12 = vadd.f32 1e-05, %v566_v11 }
 0x6d7   :  { %1317 = vrsqrt.f32 %v568_v12 }
 0x6df   :  { %v1316_v13 = vpop.eup %1315 }
 0x6e0   :  { %v571_v15 = vmul.f32 %v1316_v13, %v557_v59 }
 0x6e1   :  { %v1318_v16 = vpop.eup %1317 }
 0x6e2   :  { %v572_v17 = vmul.f32 %v1318_v16, %v558_v61  ;;  %v579_v18 = vmul.f32 %v1025_v14, %v571_v15  ;;  %v1045_v15 = vld [vmem:[%s1761_s7 + $0x1] ss:$0 sm:$0xff]  ;;  %s1441_s7 = scalar_lea.vmem %s980_s6, 256 }
 0x6e3   :  { %p1442_p12 = scmp.ne.s32.totalorder %s980_s6, %s1441_s7  ;;  %p1447_p0 = scmp.lt.s32.totalorder %s1441_s7, %s1441_s7 }
 0x6e4   :  { %v580_v20 = vmul.f32 %v1025_v14, %v572_v17  ;;  %v587_v21 = vadd.f32 %v1026_v19, %v579_v18 }
 0x6e5   :  { %p1448_p1 = por %p1447_p0, %p1446_p13 }
 0x6e6   :  { %v588_v22 = vadd.f32 %v1026_v19, %v580_v20 }
 0x6e7   :  { %p1449_p2 = pnand %p1448_p1, %p1442_p12 }
 0x6e8   :  { %v589_v23 = vpack.c.bf16 %v588_v22, %v587_v21 }
 0x6ea   :  { %1187 = vmatmul.mubr.bf16.vlgmr.msra.gmra.mrb[4].mxu1 %v589_v23 }
 0x6eb   :  { %1226 = vmatprep.mubr.msk.bf16.mxu1 %vm1479_vm0, %v1478_v0  ;;  %1211 = vmatpush3.bf16.msra.mxu1 %v1283_v57 }
 0x6ec   :  { %1212 = vmatprep.subr.bf16.mxu1 %v1478_v0 }
 0x6ef   :  { %1213 = vmatpush3.bf16.msra.mxu1 %v1284_v58 }
 0x6f0   :  { %1214 = vmatprep.subr.bf16.mxu1 %v1478_v0 }
 0x6f3   :  { %1215 = vmatpush3.bf16.msra.mxu1 %v1285_v2 }
 0x6f4   :  { %1216 = vmatprep.subr.bf16.mxu1 %v1478_v0 }
 0x6f7   :  { %1217 = vmatpush3.bf16.msra.mxu1 %v1286_v3 }
 0x6f8   :  { %1218 = vmatprep.subr.bf16.mxu1 %v1478_v0 }
 0x6fb   :  { %1219 = vmatpush3.bf16.msra.mxu1 %v1287_v4 }
 0x6fc   :  { %1220 = vmatprep.subr.bf16.mxu1 %v1478_v0 }
 0x6ff   :  { %1221 = vmatpush3.bf16.msra.mxu1 %v1288_v5 }
 0x700   :  { %1222 = vmatprep.subr.bf16.mxu1 %v1478_v0 }
 0x703   :  { %1223 = vmatpush3.bf16.msra.mxu1 %v1289_v6 }
 0x704   :  { %1224 = vmatprep.subr.bf16.mxu1 %v1478_v0  ;;  %v1046_v0 = vld [vmem:[%s1762_s8 + $0x1] ss:$0 sm:$0xff] }
 0x707   :  { %1225 = vmatpush3.bf16.msra.mxu1 %v1290_v7 }
 0x7bd   :  { %v689_v34 = vpop.f32.mrb[4].mxu1 }
 0x7be   :  { %v696_v35 = vsub.f32 0.0, %v689_v34  ;;  %v1188_v36 = vpop.f32.mrb[5].mxu1 }
 0x7bf   :  { %v692_v37 = vpop.f32.mrb[6].mxu1 }
 0x7c0   :  { %v698_v38 = vmul.f32 1.442695, %v696_v35  ;;  %v697_v39 = vsub.f32 0.0, %v692_v37  ;;  %v1189_v40 = vpop.f32.mrb[7].mxu1 }
 0x7c2   :  { %1319 = vpow2.f32 %v698_v38  ;;  %v700_v41 = vmul.f32 1.442695, %v697_v39 }
 0x7c4   :  { %1321 = vpow2.f32 %v700_v41 }
 0x7cc   :  { %v1320_v26 = vpop.eup %1319 }
 0x7cd   :  { %v702_v42 = vadd.f32 1.0, %v1320_v26 }
 0x7ce   :  { %v1322_v43 = vpop.eup %1321 }
 0x7cf   :  { %1323 = vrcp.f32 %v702_v42  ;;  %v703_v28 = vadd.f32 1.0, %v1322_v43 }
 0x7d1   :  { %1325 = vrcp.f32 %v703_v28 }
 0x7d9   :  { %v1324_v44 = vpop.eup %1323 }
 0x7da   :  { %v706_v46 = vmul.f32 %v1324_v44, %v689_v34 }
 0x7db   :  { %v1326_v45 = vpop.eup %1325 }
 0x7dc   :  { %v707_v47 = vmul.f32 %v1326_v45, %v692_v37 }
 0x7de   :  { %v708_v48 = vpack.c.bf16 %v707_v47, %v706_v46 }
 0x7e0   :  { %1207 = vmatmul.mubr.bf16.vlgmr.msra.gmra.mrb[8].mxu0 %v708_v48 }
 0x8b3   :  { %v808_v49 = vpop.f32.mrb[8].mxu0 }
 0x8b4   :  { %v815_v50 = vadd.f32 %v808_v49, %v1693_v51  ;;  %v1208_v52 = vpop.f32.mrb[9].mxu0 }
 0x8b5   :  { %v811_v54 = vpop.f32.mrb[10].mxu0 }
 0x8b6   :  { %v816_v55 = vadd.f32 %v811_v54, %v1696_v53  ;;  %821 = vadd.xlane.f32.xlu0 %v815_v50  ;;  %v1209_v56 = vpop.f32.mrb[11].mxu0 }
 0x8b8   :  { %823 = vadd.xlane.f32.xlu1 %v816_v55 }
 0x943   :  { %v822_v59 = vpop.xlane.xlu0 %821 }
 0x944   :  { %v825_v60 = vmul.f32 0.0078125, %v822_v59 }
 0x945   :  { %v824_v61 = vpop.xlane.xlu1 %823 }
 0x946   :  { %v827_v62 = vsub.f32 %v815_v50, %v825_v60  ;;  %v826_v51 = vmul.f32 0.0078125, %v824_v61 }
 0x948   :  { %v828_v63 = vsub.f32 %v816_v55, %v826_v51  ;;  %v829_v1 = vmul.f32 %v827_v62, %v827_v62 }
 0x94a   :  { %831 = vadd.xlane.f32.xlu0 %v829_v1  ;;  %v830_v53 = vmul.f32 %v828_v63, %v828_v63 }
 0x94c   :  { %833 = vadd.xlane.f32.xlu1 %v830_v53 }
 0x9d7   :  { %v832_v8 = vpop.xlane.xlu0 %831 }
 0x9d8   :  { %v835_v9 = vmul.f32 0.0078125, %v832_v8 }
 0x9d9   :  { %v834_v10 = vpop.xlane.xlu1 %833 }
 0x9da   :  { %v837_v11 = vadd.f32 1e-05, %v835_v9  ;;  %v836_v12 = vmul.f32 0.0078125, %v834_v10 }
 0x9dc   :  { %1327 = vrsqrt.f32 %v837_v11  ;;  %v838_v13 = vadd.f32 1e-05, %v836_v12 }
 0x9de   :  { %1329 = vrsqrt.f32 %v838_v13 }
 0x9e6   :  { %v1328_v14 = vpop.eup %1327 }
 0x9e7   :  { %v841_v16 = vmul.f32 %v1328_v14, %v827_v62 }
 0x9e8   :  { %v1330_v17 = vpop.eup %1329 }
 0x9e9   :  { %v842_v18 = vmul.f32 %v1330_v17, %v828_v63  ;;  %v849_v19 = vmul.f32 %v1045_v15, %v841_v16 }
 0x9eb   :  { %v850_v20 = vmul.f32 %v1045_v15, %v842_v18  ;;  %v857_v21 = vadd.f32 %v1046_v0, %v849_v19 }
 0x9ed   :  { %v858_v22 = vadd.f32 %v1046_v0, %v850_v20 }
 0x9ef   :  { %v859_v23 = vpack.c.bf16 %v858_v22, %v857_v21 }
 0x9f1   :  { %1227 = vmatmul.mubr.bf16.vlgmr.msra.gmra.mrb[8].mxu1 %v859_v23 }
 0xac4   :  { %v965_v25 = vpop.f32.mrb[8].mxu1 }
 0xac5   :  { %v966_v27 = vadd.f32 %v1047_v24, %v965_v25  ;;  %v1228_v29 = vpop.f32.mrb[9].mxu1 }
 0xac6   :  { %v968_v30 = vpop.f32.mrb[10].mxu1 }
 0xac7   :  { %972 = vst [vmem:[#allocation11] sm:$0xff] %v966_v27  ;;  %v969_v31 = vadd.f32 %v1047_v24, %v968_v30  ;;  %v1229_v32 = vpop.f32.mrb[11].mxu1 }
 0xac9   :  { %973 = vst [vmem:[#allocation11 + $0x8] sm:$0xff] %v969_v31 }
 0xaca   :  { %1452 = shalt.err (!%p1449_p2)
}
 0xacb   :  { %s1453_s20 = scalar_lea.hbm %s1765_s11, 256 }
 0xacc   :  { %p1454_p3 = scmp.ne.s32.totalorder %s1765_s11, %s1453_s20  ;;  %p1457_p4 = scmp.lt.u32.totalorder %s1453_s20, %s1765_s11 }
 0xace   :  { %p1459_p5 = pnand %p1457_p4, %p1454_p3 }
 0xad0   :  { %1462 = shalt.err (!%p1459_p5)
}
 0xad1   :  { %s1481_s9 = smov 128   ;;  %s1482_s29 = smov 8  }
 0xad2   :  { %985 = dma.vmem_to_hbm [thread:$0]  %s980_s6, 256, %s1765_s11, [#allocation4], %s1481_s9, %s1481_s9, %s1482_s29  }
 0xad3   :  { %1469 = dma.done.wait [#allocation4], 256  }
 0xad4   :  { %1470 = vsyncadd [#allocation4], 4294967040 }
 0xad5   :  { %989 = vsyncpa [#allocation3], 1 }
 0xad6   :  { %990 = vsyncpa [#allocation6], 1 }
 0xad7   :  { %991 = vsyncpa [#allocation9], 1 }
 0xad8   :  { %992 = vsyncpa [#allocation4], 1 }

</bundles_post_ra>
